<compile_context>
chip_gen: v7x
topology: tpu7x:2x2x1
jax: 0.10.0
libtpu: 0.0.40
codegen_flags: <defaults>
</compile_context>

<pallas_src>
import math
from functools import partial

import jax
import jax.numpy as jnp
from jax.experimental import pallas as pl
from jax.experimental.pallas import tpu as pltpu


# MXU operand dtype (accumulation is always f32).  Set to jnp.float32 for exact-f32
# parity checks; bf16 halves VMEM/DMA bytes and runs the MXU at full rate.
MXU_DTYPE = jnp.bfloat16


# ----------------------------- in-kernel helpers ----------------------------- #

def _mm(a, b):
    """MXU matmul with f32 accumulation; operands cast to MXU_DTYPE (no-op if already)."""
    return jnp.dot(a.astype(MXU_DTYPE), b.astype(MXU_DTYPE),
                   preferred_element_type=jnp.float32)


def _eye(n):
    return jnp.where(
        jax.lax.broadcasted_iota(jnp.int32, (n, n), 0)
        == jax.lax.broadcasted_iota(jnp.int32, (n, n), 1), 1.0, 0.0)


def _gcn_norm(a, eye, ones_col):
    """Symmetric GCN normalization of a dense symmetric 0/1 adjacency (adds self loops).

    Returned matrix is pre-cast to MXU_DTYPE once (hoisted cast, reused by all matmuls).
    """
    a_hat = a + eye
    # degrees: one MXU matvec (exact on 0/1 entries) + one sublane reduce
    deg_col = _mm(a_hat, ones_col)                       # [n, 1]
    deg_row = jnp.sum(a_hat, axis=0, keepdims=True)      # [1, n]
    d_col = jnp.where(deg_col > 0.0, jax.lax.rsqrt(deg_col), 0.0)
    d_row = jnp.where(deg_row > 0.0, jax.lax.rsqrt(deg_row), 0.0)
    return (a_hat * d_col * d_row).astype(MXU_DTYPE)


def _gcn_layer(a_n_b, x, w, b, *, relu, a_first):
    """Y = A_hat @ X @ W + b, NxN contraction ordered against the narrower feature side."""
    if a_first:                       # Cin < Cout: (A @ X) @ W
        y = _mm(_mm(a_n_b, x), w) + b
    else:                             # Cout <= Cin: A @ (X @ W)
        y = _mm(a_n_b, _mm(x, w)) + b
    if relu:
        y = jnp.maximum(y, 0.0)
    return y


def _gate(x, p_col):
    """TopKPooling gating: s = tanh((x . p)/||p||) via MXU; returns (x * s, s) in f32."""
    inv_norm = 1.0 / (jnp.sqrt(jnp.sum(p_col * p_col)) + 1e-16)
    s = jnp.tanh(_mm(x, p_col) * inv_norm)               # [n, 1]
    return x * s, s


def _topk_masks(s_col, k, eye, valid_col=None):
    """In-kernel, loop-free top-k *set* selection via pairwise ranking.

    rank[i] = #{j : s[j] > s[i]}  +  #{j < i : s[j] == s[i]}   (stable, lower index wins)
    Returns 0/1 masks of the k best nodes as a column [n,1] and a row [1,n].
    """
    n = s_col.shape[0]
    if valid_col is not None:
        s_col = jnp.where(valid_col > 0.0, s_col, -1e9)   # ineligible nodes can never win
    # exact column -> row copy without a transpose (eye-select + sublane reduce)
    s_row = jnp.sum(eye * s_col, axis=0, keepdims=True)   # [1, n]
    idx_i = jax.lax.broadcasted_iota(jnp.int32, (n, n), 0)
    idx_j = jax.lax.broadcasted_iota(jnp.int32, (n, n), 1)
    ties = s_row == s_col
    j_beats_i = jnp.where((s_row > s_col) | (ties & (idx_j < idx_i)), 1.0, 0.0)
    i_beats_j = jnp.where((s_col > s_row) | (ties & (idx_i < idx_j)), 1.0, 0.0)
    rank_col = jnp.sum(j_beats_i, axis=1, keepdims=True)  # [n, 1]
    rank_row = jnp.sum(i_beats_j, axis=0, keepdims=True)  # [1, n]
    m_col = jnp.where(rank_col < float(k), 1.0, 0.0)
    m_row = jnp.where(rank_row < float(k), 1.0, 0.0)
    return m_col, m_row


# ------------------------------- fused kernel --------------------------------- #

def _gcn_unet_kernel(src_ref, dst_ref, x_ref,
                     w1_ref, b1_ref, p1_ref,
                     w2_ref, b2_ref, p2_ref,
                     w3_ref, b3_ref, pu1_ref,
                     w4_ref, b4_ref, pu2_ref,
                     w5_ref, b5_ref,
                     w6_ref, b6_ref,
                     out_ref, *, k1, k2):
    n = out_ref.shape[0]
    e2 = src_ref.shape[1]
    eye = _eye(n)
    ones_col = jnp.ones((n, 1), jnp.float32)

    # ---- dense symmetric 0/1 adjacency built on the MXU (no XLA scatter) ----
    src_oh_t = jnp.where(
        jax.lax.broadcasted_iota(jnp.int32, (n, e2), 0) == src_ref[...], 1.0, 0.0)  # [n, e2]
    dst_oh = jnp.where(
        jax.lax.broadcasted_iota(jnp.int32, (e2, n), 1) == dst_ref[...], 1.0, 0.0)  # [e2, n]
    a0 = jnp.minimum(_mm(src_oh_t, dst_oh), 1.0)    # exact: 0/1 counts clamped to 1
    a0n = _gcn_norm(a0, eye, ones_col)

    # ---- conv1 (+ReLU) + pool1 gating + in-kernel top-k (k1) ----
    y1 = _gcn_layer(a0n, x_ref[...], w1_ref[...], b1_ref[...],
                    relu=True, a_first=True)        # Cin=4 < Cout=32
    x1g, s1 = _gate(y1, p1_ref[...])
    m1c, m1r = _topk_masks(s1, k1, eye)

    # pooled graph #1 kept full-size as a masked adjacency (permutation-free, equivalent)
    a1n = _gcn_norm(a0 * m1c * m1r, eye, ones_col)

    # ---- conv2 (+ReLU) + pool2 gating + in-kernel top-k (k2, restricted to m1) ----
    y2 = _gcn_layer(a1n, x1g, w2_ref[...], b2_ref[...], relu=True, a_first=False)
    x2g, s2 = _gate(y2, p2_ref[...])
    m2c, m2r = _topk_masks(s2, k2, eye, valid_col=m1c)

    a2n = _gcn_norm(a0 * m2c * m2r, eye, ones_col)

    # ---- conv3 ----
    x3 = _gcn_layer(a2n, x2g, w3_ref[...], b3_ref[...], relu=True, a_first=False)

    # unpool1: TopKPooling(ratio=2.0) cannot create nodes -> reduces to gating every node.
    # TODO(synk): original module assigns the whole pooling tuple to x4 (a bug); take x only.
    x3g, _ = _gate(x3, pu1_ref[...])

    # ---- conv4 ----
    x4 = _gcn_layer(a2n, x3g, w4_ref[...], b4_ref[...], relu=True, a_first=False)

    # unpool2: gate, then zero-filled scatter back onto the level-1 graph (= mask by m2).
    # TODO(synk): original feeds a k2-node tensor to the k1-node graph (shape bug); documented deviation.
    x4g, _ = _gate(x4, pu2_ref[...])
    x4u = x4g * m2c

    # ---- conv5, zero-filled scatter back onto the original graph, conv6 ----
    x5 = _gcn_layer(a1n, x4u, w5_ref[...], b5_ref[...], relu=True, a_first=False)
    x5u = x5 * m1c
    out_ref[...] = _gcn_layer(a0n, x5u, w6_ref[...], b6_ref[...],
                              relu=False, a_first=False)   # Cout=4 < Cin=32: X@W first


# --------------------------------- JAX glue ------------------------------------ #

def gcn_unet_forward(params, x, edge_index, batch):
    del batch  # single-graph example: batch is all zeros, top-k is global
    n = x.shape[0]
    k1 = int(math.ceil(0.5 * n))
    k2 = int(math.ceil(0.5 * k1))

    # symmetrize the edge list host-side (cheap concat; the adjacency matrix itself is
    # built inside the kernel on the MXU — no XLA scatter anywhere)
    src = jnp.concatenate([edge_index[0], edge_index[1]]).astype(jnp.int32)
    dst = jnp.concatenate([edge_index[1], edge_index[0]]).astype(jnp.int32)
    e2 = src.shape[0]
    src_row = src.reshape(1, e2)
    dst_col = dst.reshape(e2, 1)

    out_c = params["w6"].shape[1]
    args = (src_row, dst_col, x,
            params["w1"], params["b1"], params["p1"],
            params["w2"], params["b2"], params["p2"],
            params["w3"], params["b3"], params["pu1"],
            params["w4"], params["b4"], params["pu2"],
            params["w5"], params["b5"],
            params["w6"], params["b6"])

    vmem_spec = pl.BlockSpec(memory_space=pltpu.MemorySpace.VMEM)
    return pl.pallas_call(
        partial(_gcn_unet_kernel, k1=k1, k2=k2),
        out_shape=jax.ShapeDtypeStruct((n, out_c), jnp.float32),
        in_specs=[vmem_spec] * len(args),
        out_specs=vmem_spec,
    )(*args)


def init_params(key, in_channels, hidden_channels, out_channels):
    ks = jax.random.split(key, 10)

    def lin(k, cin, cout):
        scale = 1.0 / math.sqrt(cin)
        return (jax.random.normal(k, (cin, cout), jnp.float32) * scale,
                jnp.zeros((1, cout), jnp.float32))

    w1, b1 = lin(ks[0], in_channels, hidden_channels)
    w2, b2 = lin(ks[1], hidden_channels, hidden_channels)
    w3, b3 = lin(ks[2], hidden_channels, hidden_channels)
    w4, b4 = lin(ks[3], hidden_channels, hidden_channels)
    w5, b5 = lin(ks[4], hidden_channels, hidden_channels)
    w6, b6 = lin(ks[5], hidden_channels, out_channels)
    # TopKPooling score vectors, stored column-shaped [H, 1] so the gating reduce is an MXU dot
    p1 = jax.random.normal(ks[6], (hidden_channels, 1), jnp.float32)
    p2 = jax.random.normal(ks[7], (hidden_channels, 1), jnp.float32)
    pu1 = jax.random.normal(ks[8], (hidden_channels, 1), jnp.float32)
    pu2 = jax.random.normal(ks[9], (hidden_channels, 1), jnp.float32)
    return dict(w1=w1, b1=b1, w2=w2, b2=b2, w3=w3, b3=b3, w4=w4, b4=b4,
                w5=w5, b5=b5, w6=w6, b6=b6, p1=p1, p2=p2, pu1=pu1, pu2=pu2)


if __name__ == "__main__":
    N = 32
    IN_C, HID_C, OUT_C = 4, 32, 4

    key = jax.random.PRNGKey(0)
    k_param, k_x = jax.random.split(key)

    params = init_params(k_param, IN_C, HID_C, OUT_C)
    x = jax.random.normal(k_x, (N, IN_C), jnp.float32)

    # deterministic graph: ring + skip-5 edges, both directions
    src = jnp.arange(N, dtype=jnp.int32)
    d1 = (src + 1) % N
    d5 = (src + 5) % N
    edge_index = jnp.concatenate(
        [jnp.stack([src, d1]), jnp.stack([d1, src]),
         jnp.stack([src, d5]), jnp.stack([d5, src])], axis=1).astype(jnp.int32)
    batch = jnp.zeros((N,), jnp.int32)

    fwd = jax.jit(gcn_unet_forward)
    out = jax.block_until_ready(fwd(params, x, edge_index, batch))

    assert out.shape == (N, OUT_C), out.shape
    assert bool(jnp.all(jnp.isfinite(out)))
    print("KERNEL_OK")
</pallas_src>

<mosaic_0001>
module attributes {stable_mosaic.version = 11 : i64} {
  func.func @_gcn_unet_kernel(%arg0: memref<1x256xi32, #tpu.memory_space<vmem>>, %arg1: memref<256x1xi32, #tpu.memory_space<vmem>>, %arg2: memref<32x4xf32, #tpu.memory_space<vmem>>, %arg3: memref<4x32xf32, #tpu.memory_space<vmem>>, %arg4: memref<1x32xf32, #tpu.memory_space<vmem>>, %arg5: memref<32x1xf32, #tpu.memory_space<vmem>>, %arg6: memref<32x32xf32, #tpu.memory_space<vmem>>, %arg7: memref<1x32xf32, #tpu.memory_space<vmem>>, %arg8: memref<32x1xf32, #tpu.memory_space<vmem>>, %arg9: memref<32x32xf32, #tpu.memory_space<vmem>>, %arg10: memref<1x32xf32, #tpu.memory_space<vmem>>, %arg11: memref<32x1xf32, #tpu.memory_space<vmem>>, %arg12: memref<32x32xf32, #tpu.memory_space<vmem>>, %arg13: memref<1x32xf32, #tpu.memory_space<vmem>>, %arg14: memref<32x1xf32, #tpu.memory_space<vmem>>, %arg15: memref<32x32xf32, #tpu.memory_space<vmem>>, %arg16: memref<1x32xf32, #tpu.memory_space<vmem>>, %arg17: memref<32x4xf32, #tpu.memory_space<vmem>>, %arg18: memref<1x4xf32, #tpu.memory_space<vmem>>, %arg19: memref<32x4xf32, #tpu.memory_space<vmem>>) attributes {dimension_semantics = [], scalar_prefetch = 0 : i64, scratch_operands = 0 : i64, tpu.core_type = #tpu.core_type<tc>} {
    %0 = tpu.iota {dimensions = array<i32: 0>} : vector<32x32xi32>
    %1 = tpu.iota {dimensions = array<i32: 1>} : vector<32x32xi32>
    %2 = arith.cmpi eq, %0, %1 : vector<32x32xi32>
    %cst = arith.constant 1.000000e+00 : f32
    %cst_0 = arith.constant 0.000000e+00 : f32
    %3 = vector.broadcast %cst : f32 to vector<32x32xf32>
    %4 = vector.broadcast %cst_0 : f32 to vector<32x32xf32>
    %5 = arith.select %2, %3, %4 : vector<32x32xi1>, vector<32x32xf32>
    %cst_1 = arith.constant 1.000000e+00 : f32
    %6 = vector.broadcast %cst_1 : f32 to vector<32x1xf32>
    %7 = tpu.iota {dimensions = array<i32: 0>} : vector<32x256xi32>
    %c0 = arith.constant 0 : index
    %c0_2 = arith.constant 0 : index
    %8 = vector.load %arg0[%c0, %c0_2] : memref<1x256xi32, #tpu.memory_space<vmem>>, vector<1x256xi32>
    %9 = vector.broadcast %8 : vector<1x256xi32> to vector<32x256xi32>
    %10 = arith.cmpi eq, %7, %9 : vector<32x256xi32>
    %cst_3 = arith.constant 1.000000e+00 : f32
    %cst_4 = arith.constant 0.000000e+00 : f32
    %11 = vector.broadcast %cst_3 : f32 to vector<32x256xf32>
    %12 = vector.broadcast %cst_4 : f32 to vector<32x256xf32>
    %13 = arith.select %10, %11, %12 : vector<32x256xi1>, vector<32x256xf32>
    %14 = tpu.iota {dimensions = array<i32: 1>} : vector<256x32xi32>
    %c0_5 = arith.constant 0 : index
    %c0_6 = arith.constant 0 : index
    %15 = vector.load %arg1[%c0_5, %c0_6] : memref<256x1xi32, #tpu.memory_space<vmem>>, vector<256x1xi32>
    %16 = vector.broadcast %15 : vector<256x1xi32> to vector<256x32xi32>
    %17 = arith.cmpi eq, %14, %16 : vector<256x32xi32>
    %cst_7 = arith.constant 1.000000e+00 : f32
    %cst_8 = arith.constant 0.000000e+00 : f32
    %18 = vector.broadcast %cst_7 : f32 to vector<256x32xf32>
    %19 = vector.broadcast %cst_8 : f32 to vector<256x32xf32>
    %20 = arith.select %17, %18, %19 : vector<256x32xi1>, vector<256x32xf32>
    %21 = arith.truncf %13 : vector<32x256xf32> to vector<32x256xbf16>
    %22 = arith.truncf %20 : vector<256x32xf32> to vector<256x32xbf16>
    %cst_9 = arith.constant dense<0.000000e+00> : vector<32x32xf32>
    %23 = tpu.matmul %21, %22, %cst_9 {dimension_numbers = #tpu.dot_dimension_numbers<[1], [0], [0], [1], [0, 0, 1, 1], [], []>} : vector<32x256xbf16>, vector<256x32xbf16>, vector<32x32xf32> -> vector<32x32xf32>
    %cst_10 = arith.constant 1.000000e+00 : f32
    %24 = vector.broadcast %cst_10 : f32 to vector<32x32xf32>
    %25 = arith.minimumf %23, %24 : vector<32x32xf32>
    %26 = arith.addf %25, %5 : vector<32x32xf32>
    %27 = arith.truncf %26 : vector<32x32xf32> to vector<32x32xbf16>
    %28 = arith.truncf %6 : vector<32x1xf32> to vector<32x1xbf16>
    %cst_11 = arith.constant dense<0.000000e+00> : vector<32x1xf32>
    %29 = tpu.matmul %27, %28, %cst_11 {dimension_numbers = #tpu.dot_dimension_numbers<[1], [0], [0], [1], [0, 0, 1, 1], [], []>} : vector<32x32xbf16>, vector<32x1xbf16>, vector<32x1xf32> -> vector<32x1xf32>
    %cst_12 = arith.constant dense<0.000000e+00> : vector<32xf32>
    %30 = vector.multi_reduction <add>, %26, %cst_12 [0] : vector<32x32xf32> to vector<32xf32>
    %31 = vector.shape_cast %30 : vector<32xf32> to vector<1x32xf32>
    %cst_13 = arith.constant 0.000000e+00 : f32
    %32 = vector.broadcast %cst_13 : f32 to vector<32x1xf32>
    %33 = arith.cmpf ogt, %29, %32 : vector<32x1xf32>
    %34 = math.rsqrt %29 : vector<32x1xf32>
    %cst_14 = arith.constant 0.000000e+00 : f32
    %35 = vector.broadcast %cst_14 : f32 to vector<32x1xf32>
    %36 = arith.select %33, %34, %35 : vector<32x1xi1>, vector<32x1xf32>
    %cst_15 = arith.constant 0.000000e+00 : f32
    %37 = vector.broadcast %cst_15 : f32 to vector<1x32xf32>
    %38 = arith.cmpf ogt, %31, %37 : vector<1x32xf32>
    %39 = math.rsqrt %31 : vector<1x32xf32>
    %cst_16 = arith.constant 0.000000e+00 : f32
    %40 = vector.broadcast %cst_16 : f32 to vector<1x32xf32>
    %41 = arith.select %38, %39, %40 : vector<1x32xi1>, vector<1x32xf32>
    %42 = vector.broadcast %36 : vector<32x1xf32> to vector<32x32xf32>
    %43 = arith.mulf %26, %42 : vector<32x32xf32>
    %44 = vector.broadcast %41 : vector<1x32xf32> to vector<32x32xf32>
    %45 = arith.mulf %43, %44 : vector<32x32xf32>
    %46 = arith.truncf %45 : vector<32x32xf32> to vector<32x32xbf16>
    %c0_17 = arith.constant 0 : index
    %c0_18 = arith.constant 0 : index
    %47 = vector.load %arg2[%c0_17, %c0_18] : memref<32x4xf32, #tpu.memory_space<vmem>>, vector<32x4xf32>
    %c0_19 = arith.constant 0 : index
    %c0_20 = arith.constant 0 : index
    %48 = vector.load %arg3[%c0_19, %c0_20] : memref<4x32xf32, #tpu.memory_space<vmem>>, vector<4x32xf32>
    %c0_21 = arith.constant 0 : index
    %c0_22 = arith.constant 0 : index
    %49 = vector.load %arg4[%c0_21, %c0_22] : memref<1x32xf32, #tpu.memory_space<vmem>>, vector<1x32xf32>
    %50 = arith.truncf %47 : vector<32x4xf32> to vector<32x4xbf16>
    %cst_23 = arith.constant dense<0.000000e+00> : vector<32x4xf32>
    %51 = tpu.matmul %46, %50, %cst_23 {dimension_numbers = #tpu.dot_dimension_numbers<[1], [0], [0], [1], [0, 0, 1, 1], [], []>} : vector<32x32xbf16>, vector<32x4xbf16>, vector<32x4xf32> -> vector<32x4xf32>
    %52 = arith.truncf %51 : vector<32x4xf32> to vector<32x4xbf16>
    %53 = arith.truncf %48 : vector<4x32xf32> to vector<4x32xbf16>
    %cst_24 = arith.constant dense<0.000000e+00> : vector<32x32xf32>
    %54 = tpu.matmul %52, %53, %cst_24 {dimension_numbers = #tpu.dot_dimension_numbers<[1], [0], [0], [1], [0, 0, 1, 1], [], []>} : vector<32x4xbf16>, vector<4x32xbf16>, vector<32x32xf32> -> vector<32x32xf32>
    %55 = vector.broadcast %49 : vector<1x32xf32> to vector<32x32xf32>
    %56 = arith.addf %54, %55 : vector<32x32xf32>
    %cst_25 = arith.constant 0.000000e+00 : f32
    %57 = vector.broadcast %cst_25 : f32 to vector<32x32xf32>
    %58 = arith.maximumf %56, %57 : vector<32x32xf32>
    %c0_26 = arith.constant 0 : index
    %c0_27 = arith.constant 0 : index
    %59 = vector.load %arg5[%c0_26, %c0_27] : memref<32x1xf32, #tpu.memory_space<vmem>>, vector<32x1xf32>
    %60 = arith.mulf %59, %59 : vector<32x1xf32>
    %61 = vector.shape_cast %60 : vector<32x1xf32> to vector<1x32x1xf32>
    %cst_28 = arith.constant dense<0.000000e+00> : vector<1xf32>
    %62 = vector.multi_reduction <add>, %61, %cst_28 [1, 2] : vector<1x32x1xf32> to vector<1xf32>
    %63 = vector.shape_cast %62 : vector<1xf32> to vector<1x1x1xf32>
    %64 = vector.extract %63[0, 0, 0] : f32 from vector<1x1x1xf32>
    %65 = math.sqrt %64 : f32
    %cst_29 = arith.constant 1.000000e-16 : f32
    %66 = arith.addf %65, %cst_29 : f32
    %cst_30 = arith.constant 1.000000e+00 : f32
    %67 = arith.divf %cst_30, %66 : f32
    %68 = arith.truncf %58 : vector<32x32xf32> to vector<32x32xbf16>
    %69 = arith.truncf %59 : vector<32x1xf32> to vector<32x1xbf16>
    %cst_31 = arith.constant dense<0.000000e+00> : vector<32x1xf32>
    %70 = tpu.matmul %68, %69, %cst_31 {dimension_numbers = #tpu.dot_dimension_numbers<[1], [0], [0], [1], [0, 0, 1, 1], [], []>} : vector<32x32xbf16>, vector<32x1xbf16>, vector<32x1xf32> -> vector<32x1xf32>
    %71 = vector.broadcast %67 : f32 to vector<32x1xf32>
    %72 = arith.mulf %70, %71 : vector<32x1xf32>
    %73 = math.tanh %72 : vector<32x1xf32>
    %74 = vector.broadcast %73 : vector<32x1xf32> to vector<32x32xf32>
    %75 = arith.mulf %58, %74 : vector<32x32xf32>
    %76 = vector.broadcast %73 : vector<32x1xf32> to vector<32x32xf32>
    %77 = arith.mulf %5, %76 : vector<32x32xf32>
    %cst_32 = arith.constant dense<0.000000e+00> : vector<32xf32>
    %78 = vector.multi_reduction <add>, %77, %cst_32 [0] : vector<32x32xf32> to vector<32xf32>
    %79 = vector.shape_cast %78 : vector<32xf32> to vector<1x32xf32>
    %80 = tpu.iota {dimensions = array<i32: 0>} : vector<32x32xi32>
    %81 = tpu.iota {dimensions = array<i32: 1>} : vector<32x32xi32>
    %82 = vector.broadcast %79 : vector<1x32xf32> to vector<32x32xf32>
    %83 = vector.broadcast %73 : vector<32x1xf32> to vector<32x32xf32>
    %84 = arith.cmpf oeq, %82, %83 : vector<32x32xf32>
    %85 = vector.broadcast %79 : vector<1x32xf32> to vector<32x32xf32>
    %86 = vector.broadcast %73 : vector<32x1xf32> to vector<32x32xf32>
    %87 = arith.cmpf ogt, %85, %86 : vector<32x32xf32>
    %88 = arith.cmpi slt, %81, %80 : vector<32x32xi32>
    %89 = arith.andi %84, %88 : vector<32x32xi1>
    %90 = arith.ori %87, %89 : vector<32x32xi1>
    %cst_33 = arith.constant 1.000000e+00 : f32
    %cst_34 = arith.constant 0.000000e+00 : f32
    %91 = vector.broadcast %cst_33 : f32 to vector<32x32xf32>
    %92 = vector.broadcast %cst_34 : f32 to vector<32x32xf32>
    %93 = arith.select %90, %91, %92 : vector<32x32xi1>, vector<32x32xf32>
    %94 = vector.broadcast %73 : vector<32x1xf32> to vector<32x32xf32>
    %95 = vector.broadcast %79 : vector<1x32xf32> to vector<32x32xf32>
    %96 = arith.cmpf ogt, %94, %95 : vector<32x32xf32>
    %97 = arith.cmpi slt, %80, %81 : vector<32x32xi32>
    %98 = arith.andi %84, %97 : vector<32x32xi1>
    %99 = arith.ori %96, %98 : vector<32x32xi1>
    %cst_35 = arith.constant 1.000000e+00 : f32
    %cst_36 = arith.constant 0.000000e+00 : f32
    %100 = vector.broadcast %cst_35 : f32 to vector<32x32xf32>
    %101 = vector.broadcast %cst_36 : f32 to vector<32x32xf32>
    %102 = arith.select %99, %100, %101 : vector<32x32xi1>, vector<32x32xf32>
    %cst_37 = arith.constant dense<0.000000e+00> : vector<32xf32>
    %103 = vector.multi_reduction <add>, %93, %cst_37 [1] : vector<32x32xf32> to vector<32xf32>
    %104 = vector.shape_cast %103 : vector<32xf32> to vector<32x1xf32>
    %cst_38 = arith.constant dense<0.000000e+00> : vector<32xf32>
    %105 = vector.multi_reduction <add>, %102, %cst_38 [0] : vector<32x32xf32> to vector<32xf32>
    %106 = vector.shape_cast %105 : vector<32xf32> to vector<1x32xf32>
    %cst_39 = arith.constant 1.600000e+01 : f32
    %107 = vector.broadcast %cst_39 : f32 to vector<32x1xf32>
    %108 = arith.cmpf olt, %104, %107 : vector<32x1xf32>
    %cst_40 = arith.constant 1.000000e+00 : f32
    %cst_41 = arith.constant 0.000000e+00 : f32
    %109 = vector.broadcast %cst_40 : f32 to vector<32x1xf32>
    %110 = vector.broadcast %cst_41 : f32 to vector<32x1xf32>
    %111 = arith.select %108, %109, %110 : vector<32x1xi1>, vector<32x1xf32>
    %cst_42 = arith.constant 1.600000e+01 : f32
    %112 = vector.broadcast %cst_42 : f32 to vector<1x32xf32>
    %113 = arith.cmpf olt, %106, %112 : vector<1x32xf32>
    %cst_43 = arith.constant 1.000000e+00 : f32
    %cst_44 = arith.constant 0.000000e+00 : f32
    %114 = vector.broadcast %cst_43 : f32 to vector<1x32xf32>
    %115 = vector.broadcast %cst_44 : f32 to vector<1x32xf32>
    %116 = arith.select %113, %114, %115 : vector<1x32xi1>, vector<1x32xf32>
    %117 = vector.broadcast %111 : vector<32x1xf32> to vector<32x32xf32>
    %118 = arith.mulf %25, %117 : vector<32x32xf32>
    %119 = vector.broadcast %116 : vector<1x32xf32> to vector<32x32xf32>
    %120 = arith.mulf %118, %119 : vector<32x32xf32>
    %121 = arith.addf %120, %5 : vector<32x32xf32>
    %122 = arith.truncf %121 : vector<32x32xf32> to vector<32x32xbf16>
    %123 = arith.truncf %6 : vector<32x1xf32> to vector<32x1xbf16>
    %cst_45 = arith.constant dense<0.000000e+00> : vector<32x1xf32>
    %124 = tpu.matmul %122, %123, %cst_45 {dimension_numbers = #tpu.dot_dimension_numbers<[1], [0], [0], [1], [0, 0, 1, 1], [], []>} : vector<32x32xbf16>, vector<32x1xbf16>, vector<32x1xf32> -> vector<32x1xf32>
    %cst_46 = arith.constant dense<0.000000e+00> : vector<32xf32>
    %125 = vector.multi_reduction <add>, %121, %cst_46 [0] : vector<32x32xf32> to vector<32xf32>
    %126 = vector.shape_cast %125 : vector<32xf32> to vector<1x32xf32>
    %cst_47 = arith.constant 0.000000e+00 : f32
    %127 = vector.broadcast %cst_47 : f32 to vector<32x1xf32>
    %128 = arith.cmpf ogt, %124, %127 : vector<32x1xf32>
    %129 = math.rsqrt %124 : vector<32x1xf32>
    %cst_48 = arith.constant 0.000000e+00 : f32
    %130 = vector.broadcast %cst_48 : f32 to vector<32x1xf32>
    %131 = arith.select %128, %129, %130 : vector<32x1xi1>, vector<32x1xf32>
    %cst_49 = arith.constant 0.000000e+00 : f32
    %132 = vector.broadcast %cst_49 : f32 to vector<1x32xf32>
    %133 = arith.cmpf ogt, %126, %132 : vector<1x32xf32>
    %134 = math.rsqrt %126 : vector<1x32xf32>
    %cst_50 = arith.constant 0.000000e+00 : f32
    %135 = vector.broadcast %cst_50 : f32 to vector<1x32xf32>
    %136 = arith.select %133, %134, %135 : vector<1x32xi1>, vector<1x32xf32>
    %137 = vector.broadcast %131 : vector<32x1xf32> to vector<32x32xf32>
    %138 = arith.mulf %121, %137 : vector<32x32xf32>
    %139 = vector.broadcast %136 : vector<1x32xf32> to vector<32x32xf32>
    %140 = arith.mulf %138, %139 : vector<32x32xf32>
    %141 = arith.truncf %140 : vector<32x32xf32> to vector<32x32xbf16>
    %c0_51 = arith.constant 0 : index
    %c0_52 = arith.constant 0 : index
    %142 = vector.load %arg6[%c0_51, %c0_52] : memref<32x32xf32, #tpu.memory_space<vmem>>, vector<32x32xf32>
    %c0_53 = arith.constant 0 : index
    %c0_54 = arith.constant 0 : index
    %143 = vector.load %arg7[%c0_53, %c0_54] : memref<1x32xf32, #tpu.memory_space<vmem>>, vector<1x32xf32>
    %144 = arith.truncf %75 : vector<32x32xf32> to vector<32x32xbf16>
    %145 = arith.truncf %142 : vector<32x32xf32> to vector<32x32xbf16>
    %cst_55 = arith.constant dense<0.000000e+00> : vector<32x32xf32>
    %146 = tpu.matmul %144, %145, %cst_55 {dimension_numbers = #tpu.dot_dimension_numbers<[1], [0], [0], [1], [0, 0, 1, 1], [], []>} : vector<32x32xbf16>, vector<32x32xbf16>, vector<32x32xf32> -> vector<32x32xf32>
    %147 = arith.truncf %146 : vector<32x32xf32> to vector<32x32xbf16>
    %cst_56 = arith.constant dense<0.000000e+00> : vector<32x32xf32>
    %148 = tpu.matmul %141, %147, %cst_56 {dimension_numbers = #tpu.dot_dimension_numbers<[1], [0], [0], [1], [0, 0, 1, 1], [], []>} : vector<32x32xbf16>, vector<32x32xbf16>, vector<32x32xf32> -> vector<32x32xf32>
    %149 = vector.broadcast %143 : vector<1x32xf32> to vector<32x32xf32>
    %150 = arith.addf %148, %149 : vector<32x32xf32>
    %cst_57 = arith.constant 0.000000e+00 : f32
    %151 = vector.broadcast %cst_57 : f32 to vector<32x32xf32>
    %152 = arith.maximumf %150, %151 : vector<32x32xf32>
    %c0_58 = arith.constant 0 : index
    %c0_59 = arith.constant 0 : index
    %153 = vector.load %arg8[%c0_58, %c0_59] : memref<32x1xf32, #tpu.memory_space<vmem>>, vector<32x1xf32>
    %154 = arith.mulf %153, %153 : vector<32x1xf32>
    %155 = vector.shape_cast %154 : vector<32x1xf32> to vector<1x32x1xf32>
    %cst_60 = arith.constant dense<0.000000e+00> : vector<1xf32>
    %156 = vector.multi_reduction <add>, %155, %cst_60 [1, 2] : vector<1x32x1xf32> to vector<1xf32>
    %157 = vector.shape_cast %156 : vector<1xf32> to vector<1x1x1xf32>
    %158 = vector.extract %157[0, 0, 0] : f32 from vector<1x1x1xf32>
    %159 = math.sqrt %158 : f32
    %cst_61 = arith.constant 1.000000e-16 : f32
    %160 = arith.addf %159, %cst_61 : f32
    %cst_62 = arith.constant 1.000000e+00 : f32
    %161 = arith.divf %cst_62, %160 : f32
    %162 = arith.truncf %152 : vector<32x32xf32> to vector<32x32xbf16>
    %163 = arith.truncf %153 : vector<32x1xf32> to vector<32x1xbf16>
    %cst_63 = arith.constant dense<0.000000e+00> : vector<32x1xf32>
    %164 = tpu.matmul %162, %163, %cst_63 {dimension_numbers = #tpu.dot_dimension_numbers<[1], [0], [0], [1], [0, 0, 1, 1], [], []>} : vector<32x32xbf16>, vector<32x1xbf16>, vector<32x1xf32> -> vector<32x1xf32>
    %165 = vector.broadcast %161 : f32 to vector<32x1xf32>
    %166 = arith.mulf %164, %165 : vector<32x1xf32>
    %167 = math.tanh %166 : vector<32x1xf32>
    %168 = vector.broadcast %167 : vector<32x1xf32> to vector<32x32xf32>
    %169 = arith.mulf %152, %168 : vector<32x32xf32>
    %cst_64 = arith.constant 0.000000e+00 : f32
    %170 = vector.broadcast %cst_64 : f32 to vector<32x1xf32>
    %171 = arith.cmpf ogt, %111, %170 : vector<32x1xf32>
    %cst_65 = arith.constant -1.000000e+09 : f32
    %172 = vector.broadcast %cst_65 : f32 to vector<32x1xf32>
    %173 = arith.select %171, %167, %172 : vector<32x1xi1>, vector<32x1xf32>
    %174 = vector.broadcast %173 : vector<32x1xf32> to vector<32x32xf32>
    %175 = arith.mulf %5, %174 : vector<32x32xf32>
    %cst_66 = arith.constant dense<0.000000e+00> : vector<32xf32>
    %176 = vector.multi_reduction <add>, %175, %cst_66 [0] : vector<32x32xf32> to vector<32xf32>
    %177 = vector.shape_cast %176 : vector<32xf32> to vector<1x32xf32>
    %178 = tpu.iota {dimensions = array<i32: 0>} : vector<32x32xi32>
    %179 = tpu.iota {dimensions = array<i32: 1>} : vector<32x32xi32>
    %180 = vector.broadcast %177 : vector<1x32xf32> to vector<32x32xf32>
    %181 = vector.broadcast %173 : vector<32x1xf32> to vector<32x32xf32>
    %182 = arith.cmpf oeq, %180, %181 : vector<32x32xf32>
    %183 = vector.broadcast %177 : vector<1x32xf32> to vector<32x32xf32>
    %184 = vector.broadcast %173 : vector<32x1xf32> to vector<32x32xf32>
    %185 = arith.cmpf ogt, %183, %184 : vector<32x32xf32>
    %186 = arith.cmpi slt, %179, %178 : vector<32x32xi32>
    %187 = arith.andi %182, %186 : vector<32x32xi1>
    %188 = arith.ori %185, %187 : vector<32x32xi1>
    %cst_67 = arith.constant 1.000000e+00 : f32
    %cst_68 = arith.constant 0.000000e+00 : f32
    %189 = vector.broadcast %cst_67 : f32 to vector<32x32xf32>
    %190 = vector.broadcast %cst_68 : f32 to vector<32x32xf32>
    %191 = arith.select %188, %189, %190 : vector<32x32xi1>, vector<32x32xf32>
    %192 = vector.broadcast %173 : vector<32x1xf32> to vector<32x32xf32>
    %193 = vector.broadcast %177 : vector<1x32xf32> to vector<32x32xf32>
    %194 = arith.cmpf ogt, %192, %193 : vector<32x32xf32>
    %195 = arith.cmpi slt, %178, %179 : vector<32x32xi32>
    %196 = arith.andi %182, %195 : vector<32x32xi1>
    %197 = arith.ori %194, %196 : vector<32x32xi1>
    %cst_69 = arith.constant 1.000000e+00 : f32
    %cst_70 = arith.constant 0.000000e+00 : f32
    %198 = vector.broadcast %cst_69 : f32 to vector<32x32xf32>
    %199 = vector.broadcast %cst_70 : f32 to vector<32x32xf32>
    %200 = arith.select %197, %198, %199 : vector<32x32xi1>, vector<32x32xf32>
    %cst_71 = arith.constant dense<0.000000e+00> : vector<32xf32>
    %201 = vector.multi_reduction <add>, %191, %cst_71 [1] : vector<32x32xf32> to vector<32xf32>
    %202 = vector.shape_cast %201 : vector<32xf32> to vector<32x1xf32>
    %cst_72 = arith.constant dense<0.000000e+00> : vector<32xf32>
    %203 = vector.multi_reduction <add>, %200, %cst_72 [0] : vector<32x32xf32> to vector<32xf32>
    %204 = vector.shape_cast %203 : vector<32xf32> to vector<1x32xf32>
    %cst_73 = arith.constant 8.000000e+00 : f32
    %205 = vector.broadcast %cst_73 : f32 to vector<32x1xf32>
    %206 = arith.cmpf olt, %202, %205 : vector<32x1xf32>
    %cst_74 = arith.constant 1.000000e+00 : f32
    %cst_75 = arith.constant 0.000000e+00 : f32
    %207 = vector.broadcast %cst_74 : f32 to vector<32x1xf32>
    %208 = vector.broadcast %cst_75 : f32 to vector<32x1xf32>
    %209 = arith.select %206, %207, %208 : vector<32x1xi1>, vector<32x1xf32>
    %cst_76 = arith.constant 8.000000e+00 : f32
    %210 = vector.broadcast %cst_76 : f32 to vector<1x32xf32>
    %211 = arith.cmpf olt, %204, %210 : vector<1x32xf32>
    %cst_77 = arith.constant 1.000000e+00 : f32
    %cst_78 = arith.constant 0.000000e+00 : f32
    %212 = vector.broadcast %cst_77 : f32 to vector<1x32xf32>
    %213 = vector.broadcast %cst_78 : f32 to vector<1x32xf32>
    %214 = arith.select %211, %212, %213 : vector<1x32xi1>, vector<1x32xf32>
    %215 = vector.broadcast %209 : vector<32x1xf32> to vector<32x32xf32>
    %216 = arith.mulf %25, %215 : vector<32x32xf32>
    %217 = vector.broadcast %214 : vector<1x32xf32> to vector<32x32xf32>
    %218 = arith.mulf %216, %217 : vector<32x32xf32>
    %219 = arith.addf %218, %5 : vector<32x32xf32>
    %220 = arith.truncf %219 : vector<32x32xf32> to vector<32x32xbf16>
    %221 = arith.truncf %6 : vector<32x1xf32> to vector<32x1xbf16>
    %cst_79 = arith.constant dense<0.000000e+00> : vector<32x1xf32>
    %222 = tpu.matmul %220, %221, %cst_79 {dimension_numbers = #tpu.dot_dimension_numbers<[1], [0], [0], [1], [0, 0, 1, 1], [], []>} : vector<32x32xbf16>, vector<32x1xbf16>, vector<32x1xf32> -> vector<32x1xf32>
    %cst_80 = arith.constant dense<0.000000e+00> : vector<32xf32>
    %223 = vector.multi_reduction <add>, %219, %cst_80 [0] : vector<32x32xf32> to vector<32xf32>
    %224 = vector.shape_cast %223 : vector<32xf32> to vector<1x32xf32>
    %cst_81 = arith.constant 0.000000e+00 : f32
    %225 = vector.broadcast %cst_81 : f32 to vector<32x1xf32>
    %226 = arith.cmpf ogt, %222, %225 : vector<32x1xf32>
    %227 = math.rsqrt %222 : vector<32x1xf32>
    %cst_82 = arith.constant 0.000000e+00 : f32
    %228 = vector.broadcast %cst_82 : f32 to vector<32x1xf32>
    %229 = arith.select %226, %227, %228 : vector<32x1xi1>, vector<32x1xf32>
    %cst_83 = arith.constant 0.000000e+00 : f32
    %230 = vector.broadcast %cst_83 : f32 to vector<1x32xf32>
    %231 = arith.cmpf ogt, %224, %230 : vector<1x32xf32>
    %232 = math.rsqrt %224 : vector<1x32xf32>
    %cst_84 = arith.constant 0.000000e+00 : f32
    %233 = vector.broadcast %cst_84 : f32 to vector<1x32xf32>
    %234 = arith.select %231, %232, %233 : vector<1x32xi1>, vector<1x32xf32>
    %235 = vector.broadcast %229 : vector<32x1xf32> to vector<32x32xf32>
    %236 = arith.mulf %219, %235 : vector<32x32xf32>
    %237 = vector.broadcast %234 : vector<1x32xf32> to vector<32x32xf32>
    %238 = arith.mulf %236, %237 : vector<32x32xf32>
    %239 = arith.truncf %238 : vector<32x32xf32> to vector<32x32xbf16>
    %c0_85 = arith.constant 0 : index
    %c0_86 = arith.constant 0 : index
    %240 = vector.load %arg9[%c0_85, %c0_86] : memref<32x32xf32, #tpu.memory_space<vmem>>, vector<32x32xf32>
    %c0_87 = arith.constant 0 : index
    %c0_88 = arith.constant 0 : index
    %241 = vector.load %arg10[%c0_87, %c0_88] : memref<1x32xf32, #tpu.memory_space<vmem>>, vector<1x32xf32>
    %242 = arith.truncf %169 : vector<32x32xf32> to vector<32x32xbf16>
    %243 = arith.truncf %240 : vector<32x32xf32> to vector<32x32xbf16>
    %cst_89 = arith.constant dense<0.000000e+00> : vector<32x32xf32>
    %244 = tpu.matmul %242, %243, %cst_89 {dimension_numbers = #tpu.dot_dimension_numbers<[1], [0], [0], [1], [0, 0, 1, 1], [], []>} : vector<32x32xbf16>, vector<32x32xbf16>, vector<32x32xf32> -> vector<32x32xf32>
    %245 = arith.truncf %244 : vector<32x32xf32> to vector<32x32xbf16>
    %cst_90 = arith.constant dense<0.000000e+00> : vector<32x32xf32>
    %246 = tpu.matmul %239, %245, %cst_90 {dimension_numbers = #tpu.dot_dimension_numbers<[1], [0], [0], [1], [0, 0, 1, 1], [], []>} : vector<32x32xbf16>, vector<32x32xbf16>, vector<32x32xf32> -> vector<32x32xf32>
    %247 = vector.broadcast %241 : vector<1x32xf32> to vector<32x32xf32>
    %248 = arith.addf %246, %247 : vector<32x32xf32>
    %cst_91 = arith.constant 0.000000e+00 : f32
    %249 = vector.broadcast %cst_91 : f32 to vector<32x32xf32>
    %250 = arith.maximumf %248, %249 : vector<32x32xf32>
    %c0_92 = arith.constant 0 : index
    %c0_93 = arith.constant 0 : index
    %251 = vector.load %arg11[%c0_92, %c0_93] : memref<32x1xf32, #tpu.memory_space<vmem>>, vector<32x1xf32>
    %252 = arith.mulf %251, %251 : vector<32x1xf32>
    %253 = vector.shape_cast %252 : vector<32x1xf32> to vector<1x32x1xf32>
    %cst_94 = arith.constant dense<0.000000e+00> : vector<1xf32>
    %254 = vector.multi_reduction <add>, %253, %cst_94 [1, 2] : vector<1x32x1xf32> to vector<1xf32>
    %255 = vector.shape_cast %254 : vector<1xf32> to vector<1x1x1xf32>
    %256 = vector.extract %255[0, 0, 0] : f32 from vector<1x1x1xf32>
    %257 = math.sqrt %256 : f32
    %cst_95 = arith.constant 1.000000e-16 : f32
    %258 = arith.addf %257, %cst_95 : f32
    %cst_96 = arith.constant 1.000000e+00 : f32
    %259 = arith.divf %cst_96, %258 : f32
    %260 = arith.truncf %250 : vector<32x32xf32> to vector<32x32xbf16>
    %261 = arith.truncf %251 : vector<32x1xf32> to vector<32x1xbf16>
    %cst_97 = arith.constant dense<0.000000e+00> : vector<32x1xf32>
    %262 = tpu.matmul %260, %261, %cst_97 {dimension_numbers = #tpu.dot_dimension_numbers<[1], [0], [0], [1], [0, 0, 1, 1], [], []>} : vector<32x32xbf16>, vector<32x1xbf16>, vector<32x1xf32> -> vector<32x1xf32>
    %263 = vector.broadcast %259 : f32 to vector<32x1xf32>
    %264 = arith.mulf %262, %263 : vector<32x1xf32>
    %265 = math.tanh %264 : vector<32x1xf32>
    %266 = vector.broadcast %265 : vector<32x1xf32> to vector<32x32xf32>
    %267 = arith.mulf %250, %266 : vector<32x32xf32>
    %c0_98 = arith.constant 0 : index
    %c0_99 = arith.constant 0 : index
    %268 = vector.load %arg12[%c0_98, %c0_99] : memref<32x32xf32, #tpu.memory_space<vmem>>, vector<32x32xf32>
    %c0_100 = arith.constant 0 : index
    %c0_101 = arith.constant 0 : index
    %269 = vector.load %arg13[%c0_100, %c0_101] : memref<1x32xf32, #tpu.memory_space<vmem>>, vector<1x32xf32>
    %270 = arith.truncf %267 : vector<32x32xf32> to vector<32x32xbf16>
    %271 = arith.truncf %268 : vector<32x32xf32> to vector<32x32xbf16>
    %cst_102 = arith.constant dense<0.000000e+00> : vector<32x32xf32>
    %272 = tpu.matmul %270, %271, %cst_102 {dimension_numbers = #tpu.dot_dimension_numbers<[1], [0], [0], [1], [0, 0, 1, 1], [], []>} : vector<32x32xbf16>, vector<32x32xbf16>, vector<32x32xf32> -> vector<32x32xf32>
    %273 = arith.truncf %272 : vector<32x32xf32> to vector<32x32xbf16>
    %cst_103 = arith.constant dense<0.000000e+00> : vector<32x32xf32>
    %274 = tpu.matmul %239, %273, %cst_103 {dimension_numbers = #tpu.dot_dimension_numbers<[1], [0], [0], [1], [0, 0, 1, 1], [], []>} : vector<32x32xbf16>, vector<32x32xbf16>, vector<32x32xf32> -> vector<32x32xf32>
    %275 = vector.broadcast %269 : vector<1x32xf32> to vector<32x32xf32>
    %276 = arith.addf %274, %275 : vector<32x32xf32>
    %cst_104 = arith.constant 0.000000e+00 : f32
    %277 = vector.broadcast %cst_104 : f32 to vector<32x32xf32>
    %278 = arith.maximumf %276, %277 : vector<32x32xf32>
    %c0_105 = arith.constant 0 : index
    %c0_106 = arith.constant 0 : index
    %279 = vector.load %arg14[%c0_105, %c0_106] : memref<32x1xf32, #tpu.memory_space<vmem>>, vector<32x1xf32>
    %280 = arith.mulf %279, %279 : vector<32x1xf32>
    %281 = vector.shape_cast %280 : vector<32x1xf32> to vector<1x32x1xf32>
    %cst_107 = arith.constant dense<0.000000e+00> : vector<1xf32>
    %282 = vector.multi_reduction <add>, %281, %cst_107 [1, 2] : vector<1x32x1xf32> to vector<1xf32>
    %283 = vector.shape_cast %282 : vector<1xf32> to vector<1x1x1xf32>
    %284 = vector.extract %283[0, 0, 0] : f32 from vector<1x1x1xf32>
    %285 = math.sqrt %284 : f32
    %cst_108 = arith.constant 1.000000e-16 : f32
    %286 = arith.addf %285, %cst_108 : f32
    %cst_109 = arith.constant 1.000000e+00 : f32
    %287 = arith.divf %cst_109, %286 : f32
    %288 = arith.truncf %278 : vector<32x32xf32> to vector<32x32xbf16>
    %289 = arith.truncf %279 : vector<32x1xf32> to vector<32x1xbf16>
    %cst_110 = arith.constant dense<0.000000e+00> : vector<32x1xf32>
    %290 = tpu.matmul %288, %289, %cst_110 {dimension_numbers = #tpu.dot_dimension_numbers<[1], [0], [0], [1], [0, 0, 1, 1], [], []>} : vector<32x32xbf16>, vector<32x1xbf16>, vector<32x1xf32> -> vector<32x1xf32>
    %291 = vector.broadcast %287 : f32 to vector<32x1xf32>
    %292 = arith.mulf %290, %291 : vector<32x1xf32>
    %293 = math.tanh %292 : vector<32x1xf32>
    %294 = vector.broadcast %293 : vector<32x1xf32> to vector<32x32xf32>
    %295 = arith.mulf %278, %294 : vector<32x32xf32>
    %296 = vector.broadcast %209 : vector<32x1xf32> to vector<32x32xf32>
    %297 = arith.mulf %295, %296 : vector<32x32xf32>
    %c0_111 = arith.constant 0 : index
    %c0_112 = arith.constant 0 : index
    %298 = vector.load %arg15[%c0_111, %c0_112] : memref<32x32xf32, #tpu.memory_space<vmem>>, vector<32x32xf32>
    %c0_113 = arith.constant 0 : index
    %c0_114 = arith.constant 0 : index
    %299 = vector.load %arg16[%c0_113, %c0_114] : memref<1x32xf32, #tpu.memory_space<vmem>>, vector<1x32xf32>
    %300 = arith.truncf %297 : vector<32x32xf32> to vector<32x32xbf16>
    %301 = arith.truncf %298 : vector<32x32xf32> to vector<32x32xbf16>
    %cst_115 = arith.constant dense<0.000000e+00> : vector<32x32xf32>
    %302 = tpu.matmul %300, %301, %cst_115 {dimension_numbers = #tpu.dot_dimension_numbers<[1], [0], [0], [1], [0, 0, 1, 1], [], []>} : vector<32x32xbf16>, vector<32x32xbf16>, vector<32x32xf32> -> vector<32x32xf32>
    %303 = arith.truncf %302 : vector<32x32xf32> to vector<32x32xbf16>
    %cst_116 = arith.constant dense<0.000000e+00> : vector<32x32xf32>
    %304 = tpu.matmul %141, %303, %cst_116 {dimension_numbers = #tpu.dot_dimension_numbers<[1], [0], [0], [1], [0, 0, 1, 1], [], []>} : vector<32x32xbf16>, vector<32x32xbf16>, vector<32x32xf32> -> vector<32x32xf32>
    %305 = vector.broadcast %299 : vector<1x32xf32> to vector<32x32xf32>
    %306 = arith.addf %304, %305 : vector<32x32xf32>
    %cst_117 = arith.constant 0.000000e+00 : f32
    %307 = vector.broadcast %cst_117 : f32 to vector<32x32xf32>
    %308 = arith.maximumf %306, %307 : vector<32x32xf32>
    %309 = vector.broadcast %111 : vector<32x1xf32> to vector<32x32xf32>
    %310 = arith.mulf %308, %309 : vector<32x32xf32>
    %c0_118 = arith.constant 0 : index
    %c0_119 = arith.constant 0 : index
    %311 = vector.load %arg17[%c0_118, %c0_119] : memref<32x4xf32, #tpu.memory_space<vmem>>, vector<32x4xf32>
    %c0_120 = arith.constant 0 : index
    %c0_121 = arith.constant 0 : index
    %312 = vector.load %arg18[%c0_120, %c0_121] : memref<1x4xf32, #tpu.memory_space<vmem>>, vector<1x4xf32>
    %313 = arith.truncf %310 : vector<32x32xf32> to vector<32x32xbf16>
    %314 = arith.truncf %311 : vector<32x4xf32> to vector<32x4xbf16>
    %cst_122 = arith.constant dense<0.000000e+00> : vector<32x4xf32>
    %315 = tpu.matmul %313, %314, %cst_122 {dimension_numbers = #tpu.dot_dimension_numbers<[1], [0], [0], [1], [0, 0, 1, 1], [], []>} : vector<32x32xbf16>, vector<32x4xbf16>, vector<32x4xf32> -> vector<32x4xf32>
    %316 = arith.truncf %315 : vector<32x4xf32> to vector<32x4xbf16>
    %cst_123 = arith.constant dense<0.000000e+00> : vector<32x4xf32>
    %317 = tpu.matmul %46, %316, %cst_123 {dimension_numbers = #tpu.dot_dimension_numbers<[1], [0], [0], [1], [0, 0, 1, 1], [], []>} : vector<32x32xbf16>, vector<32x4xbf16>, vector<32x4xf32> -> vector<32x4xf32>
    %318 = vector.broadcast %312 : vector<1x4xf32> to vector<32x4xf32>
    %319 = arith.addf %317, %318 : vector<32x4xf32>
    %c0_124 = arith.constant 0 : index
    %c0_125 = arith.constant 0 : index
    %320 = vector.load %arg19[%c0_124, %c0_125] : memref<32x4xf32, #tpu.memory_space<vmem>>, vector<32x4xf32>
    tpu.vector_store %arg19[%c0_124, %c0_125], %319 {strides = array<i32>} : memref<32x4xf32, #tpu.memory_space<vmem>>, vector<32x4xf32>,
    return
  }
}

</mosaic_0001>

<bundles_post_ra>
// kernel: gcn_unet_forward.1
= control target key start
LH: loop header
LB: loop body
LE: loop exit
PB: predicated region body
PF: predicated region fallthrough
CT: control target
= control target key end

     0   :  { %v2703_v0 = vmov 0   ;;  %v64_v31 = vlaneseq  ;;  %v2704_v39 = vmov 1.0|1.0   ;;  %s3605_s1 = inlined_call_operand.vmem [shape: s32[256,1], index: 1, kind: input, shape index: {}]   ;;  %s3606_s0 = inlined_call_operand.vmem [shape: s32[1,256], index: 0, kind: input, shape index: {}]   ;;  %s3607_s2 = inlined_call_operand.vmem [shape: f32[32,4], index: 2, kind: input, shape index: {}]   ;;  %s3608_s3 = inlined_call_operand.vmem [shape: f32[4,32], index: 3, kind: input, shape index: {}]   ;;  %s3609_s5 = inlined_call_operand.vmem [shape: f32[32,1], index: 5, kind: input, shape index: {}]   ;;  %s3610_s4 = inlined_call_operand.vmem [shape: f32[1,32], index: 4, kind: input, shape index: {}]   ;;  %s3611_s6 = inlined_call_operand.vmem [shape: f32[32,32], index: 6, kind: input, shape index: {}]   ;;  %s3612_s8 = inlined_call_operand.vmem [shape: f32[32,1], index: 8, kind: input, shape index: {}]   ;;  %s3613_s7 = inlined_call_operand.vmem [shape: f32[1,32], index: 7, kind: input, shape index: {}]   ;;  %s3614_s9 = inlined_call_operand.vmem [shape: f32[32,32], index: 9, kind: input, shape index: {}]   ;;  %s3615_s11 = inlined_call_operand.vmem [shape: f32[32,1], index: 11, kind: input, shape index: {}]   ;;  %s3616_s10 = inlined_call_operand.vmem [shape: f32[1,32], index: 10, kind: input, shape index: {}]   ;;  %s3617_s12 = inlined_call_operand.vmem [shape: f32[32,32], index: 12, kind: input, shape index: {}]   ;;  %s3618_s14 = inlined_call_operand.vmem [shape: f32[32,1], index: 14, kind: input, shape index: {}]   ;;  %s3619_s13 = inlined_call_operand.vmem [shape: f32[1,32], index: 13, kind: input, shape index: {}]   ;;  %s3620_s15 = inlined_call_operand.vmem [shape: f32[32,32], index: 15, kind: input, shape index: {}]   ;;  %s3621_s17 = inlined_call_operand.vmem [shape: f32[32,4], index: 17, kind: input, shape index: {}]   ;;  %s3622_s16 = inlined_call_operand.vmem [shape: f32[1,32], index: 16, kind: input, shape index: {}]   ;;  %s3623_s18 = inlined_call_operand.vmem [shape: f32[1,4], index: 18, kind: input, shape index: {}]   ;;  %s3624_s19 = inlined_call_operand.vmem [shape: f32[32,4], index: 19, kind: output, shape index: {}]  }
   0x1   :  { %3634 = sst [smem:[#allocation2_spill]] %s3605_s1  ;;  %2624 = vset.pattern.permute.xlu1 %v2703_v0  ;;  %2623 = vset.pattern.permute.xlu0 %v2703_v0 }
   0x2   :  { %3635 = sst [smem:[#allocation3_spill]] %s3606_s0  ;;  %s3638_s20 = sld [smem:[#allocation2_spill]]  ;;  %v2903_v34 = vshrl.u32 %v64_v31, 7  ;;  %v2922_v42 = vand.u32 127, %v64_v31 }
   0x3   :  { %3636 = sst [smem:[#allocation4_spill]] %s3607_s2  ;;  %s3639_s26 = sld [smem:[#allocation3_spill]] }
   0x4   :  { %3637 = sst [smem:[#allocation5_spill]] %s3608_s3  ;;  %v86_v35 = vsub.s32 1, %v2903_v34  ;;  %v2912_v37 = vadd.s32 8, %v2903_v34  ;;  %s3640_s28 = sld [smem:[#allocation4_spill]] }
   0x5   :  { %s3641_s24 = sld [smem:[#allocation5_spill]] }
   0x8   :  { %v120_v1 = vld [vmem:[%s3638_s20 + $0x80] sm:$0xff]  ;;  %v121_v3 = vld [vmem:[%s3638_s20 + $0x88] sm:$0xff]  ;;  %v122_v5 = vld [vmem:[%s3638_s20 + $0x90] sm:$0xff] }
   0x9   :  { %v104_v2 = vld [vmem:[%s3638_s20] sm:$0xff]  ;;  %185 = vperm.xlu0 %2623, %v120_v1   ;;  %v105_v4 = vld [vmem:[%s3638_s20 + $0x8] sm:$0xff]  ;;  %v123_v6 = vld [vmem:[%s3638_s20 + $0x98] sm:$0xff] }
   0xa   :  { %137 = vperm.xlu1 %2624, %v104_v2   ;;  %v106_v7 = vld [vmem:[%s3638_s20 + $0x10] sm:$0xff]  ;;  %v107_v8 = vld [vmem:[%s3638_s20 + $0x18] sm:$0xff]  ;;  %v124_v9 = vld [vmem:[%s3638_s20 + $0xa0] sm:$0xff] }
   0xb   :  { %v125_v10 = vld [vmem:[%s3638_s20 + $0xa8] sm:$0xff]  ;;  %v108_v11 = vld [vmem:[%s3638_s20 + $0x20] sm:$0xff]  ;;  %v126_v13 = vld [vmem:[%s3638_s20 + $0xb0] sm:$0xff] }
   0xc   :  { %v109_v12 = vld [vmem:[%s3638_s20 + $0x28] sm:$0xff]  ;;  %v127_v14 = vld [vmem:[%s3638_s20 + $0xb8] sm:$0xff]  ;;  %v110_v15 = vld [vmem:[%s3638_s20 + $0x30] sm:$0xff] }
   0xd   :  { %188 = vperm.xlu0 %2623, %v121_v3   ;;  %v111_v16 = vld [vmem:[%s3638_s20 + $0x38] sm:$0xff]  ;;  %v128_v17 = vld [vmem:[%s3638_s20 + $0xc0] sm:$0xff]  ;;  %v129_v18 = vld [vmem:[%s3638_s20 + $0xc8] sm:$0xff] }
   0xe   :  { %140 = vperm.xlu1 %2624, %v105_v4   ;;  %v112_v19 = vld [vmem:[%s3638_s20 + $0x40] sm:$0xff]  ;;  %v113_v20 = vld [vmem:[%s3638_s20 + $0x48] sm:$0xff]  ;;  %v130_v21 = vld [vmem:[%s3638_s20 + $0xd0] sm:$0xff] }
   0xf   :  { %v131_v22 = vld [vmem:[%s3638_s20 + $0xd8] sm:$0xff]  ;;  %v114_v23 = vld [vmem:[%s3638_s20 + $0x50] sm:$0xff]  ;;  %v132_v25 = vld [vmem:[%s3638_s20 + $0xe0] sm:$0xff] }
  0x10   :  { %v115_v24 = vld [vmem:[%s3638_s20 + $0x58] sm:$0xff]  ;;  %v133_v26 = vld [vmem:[%s3638_s20 + $0xe8] sm:$0xff]  ;;  %v116_v27 = vld [vmem:[%s3638_s20 + $0x60] sm:$0xff] }
  0x11   :  { %191 = vperm.xlu0 %2623, %v122_v5   ;;  %v117_v28 = vld [vmem:[%s3638_s20 + $0x68] sm:$0xff]  ;;  %v134_v29 = vld [vmem:[%s3638_s20 + $0xf0] sm:$0xff]  ;;  %v135_v30 = vld [vmem:[%s3638_s20 + $0xf8] sm:$0xff]  ;;  %v82_v5 = vsub.s32 0, %v2903_v34 }
  0x12   :  { %194 = vperm.xlu1 %2624, %v123_v6   ;;  %v118_v32 = vld [vmem:[%s3638_s20 + $0x70] sm:$0xff]  ;;  %v119_v33 = vld [vmem:[%s3638_s20 + $0x78] sm:$0xff]  ;;  %v2909_v36 = vld [vmem:[%s3639_s26] sm:$0x3] }
  0x13   :  { %v2915_v38 = vrot.slane %v2909_v36, %v86_v35 }
  0x15   :  { %143 = vperm.xlu0 %2623, %v106_v7   ;;  %vm89_vm0 = vcmp.eq.s32.totalorder %v2903_v34, %v2915_v38  ;;  %vm91_vm1 = vcmp.eq.s32.totalorder %v2912_v37, %v2915_v38 }
  0x16   :  { %146 = vperm.xlu1 %2624, %v107_v8   ;;  %vm2289_vm2 = vmpackc.low %vm91_vm1, %vm89_vm0  ;;  %v83_v8 = vrot.slane %v2909_v36, %v82_v5 }
  0x17   :  { %2290 = vmatprep.mubr.msk.bf16.mxu0 %vm2289_vm2, %v2704_v39 }
  0x19   :  { %197 = vperm.xlu0 %2623, %v124_v9   ;;  %v2971_v9 = vadd.s32 16, %v2903_v34 }
  0x1a   :  { %200 = vperm.xlu1 %2624, %v125_v10   ;;  %v2974_v10 = vadd.s32 24, %v2903_v34 }
  0x1d   :  { %149 = vperm.xlu0 %2623, %v108_v11  }
  0x1e   :  { %152 = vperm.xlu1 %2624, %v109_v12  }
  0x21   :  { %203 = vperm.xlu0 %2623, %v126_v13   ;;  %v2705_v13 = vmov 1065369472  }
  0x22   :  { %206 = vperm.xlu1 %2624, %v127_v14   ;;  %2444 = vmatprep.subr.bf16.mxu1 %v2705_v13 }
  0x23   :  { %2445 = vmatpush3.bf16.msra.mxu1 %v2705_v13 }
  0x24   :  { %2446 = vmatprep.subr.bf16.mxu1 %v2705_v13 }
  0x25   :  { %155 = vperm.xlu0 %2623, %v110_v15  }
  0x26   :  { %158 = vperm.xlu1 %2624, %v111_v16  }
  0x27   :  { %2447 = vmatpush3.bf16.msra.mxu1 %v2705_v13 }
  0x29   :  { %209 = vperm.xlu0 %2623, %v128_v17  }
  0x2a   :  { %212 = vperm.xlu1 %2624, %v129_v18  }
  0x2d   :  { %161 = vperm.xlu0 %2623, %v112_v19  }
  0x2e   :  { %164 = vperm.xlu1 %2624, %v113_v20  }
  0x31   :  { %215 = vperm.xlu0 %2623, %v130_v21   ;;  %v2706_v21 = vmov 0.0  }
  0x32   :  { %218 = vperm.xlu1 %2624, %v131_v22  }
  0x35   :  { %167 = vperm.xlu0 %2623, %v114_v23  }
  0x36   :  { %170 = vperm.xlu1 %2624, %v115_v24  }
  0x39   :  { %221 = vperm.xlu0 %2623, %v132_v25  }
  0x3a   :  { %224 = vperm.xlu1 %2624, %v133_v26  }
  0x3d   :  { %173 = vperm.xlu0 %2623, %v116_v27  }
  0x3e   :  { %176 = vperm.xlu1 %2624, %v117_v28  }
  0x41   :  { %227 = vperm.xlu0 %2623, %v134_v29  }
  0x42   :  { %230 = vperm.xlu1 %2624, %v135_v30  }
  0x45   :  { %179 = vperm.xlu0 %2623, %v118_v32  }
  0x46   :  { %182 = vperm.xlu1 %2624, %v119_v33  }
  0x88   :  { %v186_v40 = vpop.permute.xlu0 %185 }
  0x89   :  { %v138_v41 = vpop.permute.xlu1 %137  ;;  %vm248_vm6 = vcmp.eq.s32.totalorder %v2922_v42, %v186_v40 }
  0x8a   :  { %vm232_vm3 = vcmp.eq.s32.totalorder %v2922_v42, %v138_v41 }
  0x8c   :  { %v189_v43 = vpop.permute.xlu0 %188 }
  0x8d   :  { %v141_v44 = vpop.permute.xlu1 %140  ;;  %vm249_vm4 = vcmp.eq.s32.totalorder %v2922_v42, %v189_v43 }
  0x8e   :  { %vm233_vm5 = vcmp.eq.s32.totalorder %v2922_v42, %v141_v44  ;;  %vm2273_vm8 = vmpackc.low %vm249_vm4, %vm248_vm6 }
  0x8f   :  { %vm2257_vm7 = vmpackc.low %vm233_vm5, %vm232_vm3  ;;  %2341 = vmatprep.subr.msk.bf16.mxu0 %vm2273_vm8, %v2704_v39 }
  0x90   :  { %v192_v45 = vpop.permute.xlu0 %191  ;;  %2342 = vmatpush3.bf16.msk.msra.mxu0 %vm2257_vm7, %v2704_v39 }
  0x91   :  { %v195_v46 = vpop.permute.xlu1 %194  ;;  %vm250_vm9 = vcmp.eq.s32.totalorder %v2922_v42, %v192_v45 }
  0x92   :  { %vm251_vm10 = vcmp.eq.s32.totalorder %v2922_v42, %v195_v46 }
  0x93   :  { %vm2275_vm11 = vmpackc.low %vm251_vm10, %vm250_vm9 }
  0x94   :  { %2343 = vmatprep.subr.msk.bf16.mxu0 %vm2275_vm11, %v2704_v39  ;;  %v144_v47 = vpop.permute.xlu0 %143 }
  0x95   :  { %v147_v48 = vpop.permute.xlu1 %146  ;;  %vm234_vm12 = vcmp.eq.s32.totalorder %v2922_v42, %v144_v47 }
  0x96   :  { %vm235_vm13 = vcmp.eq.s32.totalorder %v2922_v42, %v147_v48 }
  0x97   :  { %vm2259_vm14 = vmpackc.low %vm235_vm13, %vm234_vm12 }
  0x98   :  { %2344 = vmatpush3.bf16.msk.msra.mxu0 %vm2259_vm14, %v2704_v39  ;;  %v198_v49 = vpop.permute.xlu0 %197 }
  0x99   :  { %v201_v50 = vpop.permute.xlu1 %200  ;;  %vm252_vm15 = vcmp.eq.s32.totalorder %v2922_v42, %v198_v49 }
  0x9a   :  { %vm253_vm0 = vcmp.eq.s32.totalorder %v2922_v42, %v201_v50 }
  0x9b   :  { %vm2277_vm1 = vmpackc.low %vm253_vm0, %vm252_vm15 }
  0x9c   :  { %2345 = vmatprep.subr.msk.bf16.mxu0 %vm2277_vm1, %v2704_v39  ;;  %v150_v51 = vpop.permute.xlu0 %149 }
  0x9d   :  { %v153_v52 = vpop.permute.xlu1 %152  ;;  %vm236_vm2 = vcmp.eq.s32.totalorder %v2922_v42, %v150_v51 }
  0x9e   :  { %vm237_vm3 = vcmp.eq.s32.totalorder %v2922_v42, %v153_v52 }
  0x9f   :  { %vm2261_vm4 = vmpackc.low %vm237_vm3, %vm236_vm2 }
  0xa0   :  { %2346 = vmatpush3.bf16.msk.msra.mxu0 %vm2261_vm4, %v2704_v39  ;;  %v204_v53 = vpop.permute.xlu0 %203 }
  0xa1   :  { %v207_v54 = vpop.permute.xlu1 %206  ;;  %vm254_vm5 = vcmp.eq.s32.totalorder %v2922_v42, %v204_v53 }
  0xa2   :  { %vm255_vm6 = vcmp.eq.s32.totalorder %v2922_v42, %v207_v54  ;;  %v489_v54 = vld [vmem:[%s3640_s28] sm:$0xff] }
  0xa3   :  { %vm2279_vm7 = vmpackc.low %vm255_vm6, %vm254_vm5 }
  0xa4   :  { %2347 = vmatprep.subr.msk.bf16.mxu0 %vm2279_vm7, %v2704_v39  ;;  %v156_v55 = vpop.permute.xlu0 %155 }
  0xa5   :  { %v159_v56 = vpop.permute.xlu1 %158  ;;  %vm238_vm8 = vcmp.eq.s32.totalorder %v2922_v42, %v156_v55  ;;  %v490_v55 = vld [vmem:[%s3640_s28 + $0x8] sm:$0xff] }
  0xa6   :  { %vm239_vm9 = vcmp.eq.s32.totalorder %v2922_v42, %v159_v56 }
  0xa7   :  { %vm2263_vm10 = vmpackc.low %vm239_vm9, %vm238_vm8 }
  0xa8   :  { %2348 = vmatpush3.bf16.msk.msra.mxu0 %vm2263_vm10, %v2704_v39  ;;  %v210_v57 = vpop.permute.xlu0 %209 }
  0xa9   :  { %v213_v58 = vpop.permute.xlu1 %212  ;;  %vm256_vm11 = vcmp.eq.s32.totalorder %v2922_v42, %v210_v57  ;;  %v495_v57 = vpack.c.bf16 %v490_v55, %v489_v54 }
  0xaa   :  { %vm257_vm12 = vcmp.eq.s32.totalorder %v2922_v42, %v213_v58 }
  0xab   :  { %vm2281_vm13 = vmpackc.low %vm257_vm12, %vm256_vm11  ;;  %2452 = vmatprep.subr.bf16.mxu1 %v495_v57 }
  0xac   :  { %2349 = vmatprep.subr.msk.bf16.mxu0 %vm2281_vm13, %v2704_v39  ;;  %v162_v59 = vpop.permute.xlu0 %161 }
  0xad   :  { %v165_v60 = vpop.permute.xlu1 %164  ;;  %vm240_vm14 = vcmp.eq.s32.totalorder %v2922_v42, %v162_v59  ;;  %v491_v59 = vld [vmem:[%s3640_s28 + $0x10] sm:$0xff] }
  0xae   :  { %vm241_vm15 = vcmp.eq.s32.totalorder %v2922_v42, %v165_v60  ;;  %v492_v60 = vld [vmem:[%s3640_s28 + $0x18] sm:$0xff] }
  0xaf   :  { %vm2265_vm0 = vmpackc.low %vm241_vm15, %vm240_vm14 }
  0xb0   :  { %2350 = vmatpush3.bf16.msk.msra.mxu0 %vm2265_vm0, %v2704_v39  ;;  %v216_v61 = vpop.permute.xlu0 %215  ;;  %vm88_vm0 = vcmp.eq.s32.totalorder %v2903_v34, %v83_v8 }
  0xb1   :  { %v219_v62 = vpop.permute.xlu1 %218  ;;  %vm258_vm1 = vcmp.eq.s32.totalorder %v2922_v42, %v216_v61  ;;  %v496_v61 = vpack.c.bf16 %v492_v60, %v491_v59 }
  0xb2   :  { %vm259_vm2 = vcmp.eq.s32.totalorder %v2922_v42, %v219_v62  ;;  %v493_v62 = vld [vmem:[%s3641_s24] sm:$0xf] }
  0xb3   :  { %vm2283_vm3 = vmpackc.low %vm259_vm2, %vm258_vm1  ;;  %vm90_vm1 = vcmp.eq.s32.totalorder %v2912_v37, %v83_v8 }
  0xb4   :  { %2351 = vmatprep.subr.msk.bf16.mxu0 %vm2283_vm3, %v2704_v39  ;;  %v168_v63 = vpop.permute.xlu0 %167 }
  0xb5   :  { %v171_v0 = vpop.permute.xlu1 %170  ;;  %vm242_vm4 = vcmp.eq.s32.totalorder %v2922_v42, %v168_v63  ;;  %v554_v63 = vpack.c.bf16 %v493_v62, %v493_v62 }
  0xb6   :  { %vm243_vm5 = vcmp.eq.s32.totalorder %v2922_v42, %v171_v0 }
  0xb7   :  { %vm2267_vm6 = vmpackc.low %vm243_vm5, %vm242_vm4  ;;  %vm93_vm4 = vcmp.eq.s32.totalorder %v2971_v9, %v2915_v38  ;;  %vm95_vm5 = vcmp.eq.s32.totalorder %v2974_v10, %v2915_v38 }
  0xb8   :  { %2352 = vmatpush3.bf16.msk.msra.mxu0 %vm2267_vm6, %v2704_v39  ;;  %v222_v1 = vpop.permute.xlu0 %221 }
  0xb9   :  { %v225_v2 = vpop.permute.xlu1 %224  ;;  %vm260_vm7 = vcmp.eq.s32.totalorder %v2922_v42, %v222_v1 }
  0xba   :  { %vm261_vm8 = vcmp.eq.s32.totalorder %v2922_v42, %v225_v2 }
  0xbb   :  { %vm2285_vm9 = vmpackc.low %vm261_vm8, %vm260_vm7 }
  0xbc   :  { %2353 = vmatprep.subr.msk.bf16.mxu0 %vm2285_vm9, %v2704_v39  ;;  %v174_v3 = vpop.permute.xlu0 %173  ;;  %vm2291_vm7 = vmpackc.low %vm90_vm1, %vm88_vm0  ;;  %vm92_vm9 = vcmp.eq.s32.totalorder %v2971_v9, %v83_v8  ;;  %vm375_vm0 = vcmask 261120  }
  0xbd   :  { %v177_v4 = vpop.permute.xlu1 %176  ;;  %vm244_vm10 = vcmp.eq.s32.totalorder %v2922_v42, %v174_v3  ;;  %vm2293_vm8 = vmpackc.low %vm95_vm5, %vm93_vm4  ;;  %vm568_vm5 = vcmask 1041408  }
  0xbe   :  { %vm245_vm11 = vcmp.eq.s32.totalorder %v2922_v42, %v177_v4 }
  0xbf   :  { %vm2269_vm12 = vmpackc.low %vm245_vm11, %vm244_vm10  ;;  %vm94_vm10 = vcmp.eq.s32.totalorder %v2974_v10, %v83_v8 }
  0xc0   :  { %2354 = vmatpush3.bf16.msk.msra.mxu0 %vm2269_vm12, %v2704_v39  ;;  %v228_v6 = vpop.permute.xlu0 %227  ;;  %vm2295_vm11 = vmpackc.low %vm94_vm10, %vm92_vm9  ;;  %vm71_vm12 = vcmp.eq.s32.totalorder %v2903_v34, %v2922_v42 }
  0xc1   :  { %v231_v7 = vpop.permute.xlu1 %230  ;;  %vm262_vm13 = vcmp.eq.s32.totalorder %v2922_v42, %v228_v6  ;;  %v3002_v22 = vsel %vm71_vm12, 1.0, %v2706_v21 }
  0xc2   :  { %vm263_vm14 = vcmp.eq.s32.totalorder %v2922_v42, %v231_v7 }
  0xc3   :  { %vm2287_vm15 = vmpackc.low %vm263_vm14, %vm262_vm13  ;;  %vm72_vm13 = vcmp.eq.s32.totalorder %v2912_v37, %v2922_v42  ;;  %vm73_vm14 = vcmp.eq.s32.totalorder %v2971_v9, %v2922_v42 }
  0xc4   :  { %2355 = vmatprep.subr.msk.bf16.mxu0 %vm2287_vm15, %v2704_v39  ;;  %v180_v11 = vpop.permute.xlu0 %179  ;;  %v3005_v23 = vsel %vm72_vm13, 1.0, %v2706_v21  ;;  %vm74_vm15 = vcmp.eq.s32.totalorder %v2974_v10, %v2922_v42  ;;  %v3027_v36 = vsel %vm73_vm14, 1.0, %v2706_v21 }
  0xc5   :  { %v183_v12 = vpop.permute.xlu1 %182  ;;  %vm246_vm2 = vcmp.eq.s32.totalorder %v2922_v42, %v180_v11  ;;  %v3030_v38 = vsel %vm74_vm15, 1.0, %v2706_v21  ;;  %vm801_vm15 = vcmp.lt.s32.totalorder %v2912_v37, %v2922_v42 }
  0xc6   :  { %vm247_vm3 = vcmp.eq.s32.totalorder %v2922_v42, %v183_v12 }
  0xc7   :  { %vm2271_vm6 = vmpackc.low %vm247_vm3, %vm246_vm2 }
  0xc8   :  { %2356 = vmatpush3.bf16.msk.msra.mxu0 %vm2271_vm6, %v2704_v39 }
  0xcb   :  { %2292 = vmatmul.mubr.msk.bf16.vlgmr.msra.gmra.mrb[0].mxu0 %vm2291_vm7, %v2704_v39  ;;  %vm3630_vm7 = vcmask 7168  }
  0xcc   :  { %2294 = vmatprep.mubr.msk.bf16.mxu0 %vm2293_vm8, %v2704_v39  ;;  %vm3627_vm8 = vcmask 31744  }
  0xd3   :  { %2296 = vmatmul.mubr.msk.bf16.gmra.mrb[4].mxu0 %vm2295_vm11, %v2704_v39  ;;  %vm3628_vm11 = vcmp.lt.s32.totalorder %v2922_v42, %v2912_v37 }
 0x19e   :  { %v2357_v14 = vpop.f32.mrb[0].mxu0 }
 0x19f   :  { %v2358_v15 = vpop.f32.mrb[1].mxu0 }
 0x1a0   :  { %v2359_v16 = vadd.f32 %v2358_v15, %v2357_v14  ;;  %v2360_v17 = vpop.f32.mrb[2].mxu0 }
 0x1a1   :  { %v2361_v18 = vpop.f32.mrb[3].mxu0 }
 0x1a2   :  { %v2999_v19 = vmin.f32 %v2359_v16, 1.0  ;;  %v2362_v20 = vadd.f32 %v2361_v18, %v2360_v17 }
 0x1a4   :  { %v3007_v24 = vmin.f32 %v2362_v20, 1.0  ;;  %v3011_v25 = vadd.f32 %v2999_v19, %v3002_v22 }
 0x1a6   :  { %v3015_v26 = vadd.f32 %v3007_v24, %v3005_v23  ;;  %v2363_v27 = vpop.f32.mrb[4].mxu0  ;;  %v431_v1 = vsel %vm375_vm0, %v3011_v25, 0.0 }
 0x1a7   :  { %v2364_v28 = vpop.f32.mrb[5].mxu0 }
 0x1a8   :  { %v2365_v29 = vadd.f32 %v2364_v28, %v2363_v27  ;;  %v2366_v30 = vpop.f32.mrb[6].mxu0  ;;  %v373_v31 = vpack.c.bf16 %v3015_v26, %v3011_v25  ;;  %v432_v0 = vsel %vm375_vm0, %v3015_v26, 0.0 }
 0x1a9   :  { %v2367_v32 = vpop.f32.mrb[7].mxu0  ;;  %v433_v3 = vadd.f32 %v432_v0, %v431_v1 }
 0x1aa   :  { %v3023_v33 = vmin.f32 %v2365_v29, 1.0  ;;  %v2368_v35 = vadd.f32 %v2367_v32, %v2366_v30  ;;  %2448 = vmatprep.mubr.msk.bf16.mxu1 %vm375_vm0, %v373_v31 }
 0x1ac   :  { %v3032_v39 = vmin.f32 %v2368_v35, 1.0  ;;  %v3036_v40 = vadd.f32 %v3023_v33, %v3027_v36 }
 0x1ae   :  { %v3040_v41 = vadd.f32 %v3032_v39, %v3030_v38  ;;  %v434_v2 = vsel %vm375_vm0, %v3036_v40, 0.0 }
 0x1af   :  { %v435_v4 = vadd.f32 %v434_v2, %v433_v3 }
 0x1b0   :  { %v374_v43 = vpack.c.bf16 %v3040_v41, %v3036_v40  ;;  %v436_v5 = vsel %vm375_vm0, %v3040_v41, 0.0 }
 0x1b1   :  { %v437_v6 = vadd.f32 %v436_v5, %v435_v4 }
 0x1b2   :  { %2449 = vmatmul.mubr.msk.bf16.vlgmr.msra.gmra.mrb[0].mxu1 %vm375_vm0, %v374_v43 }
 0x1b3   :  { %2453 = vmatpush3.bf16.msra.mxu1 %v495_v57  ;;  %v438_v7 = vrot.slane %v437_v6, 4 }
 0x1b4   :  { %2454 = vmatprep.subr.bf16.mxu1 %v496_v61 }
 0x1b5   :  { %v439_v8 = vadd.f32 %v438_v7, %v437_v6 }
 0x1b7   :  { %2455 = vmatpush3.bf16.msra.mxu1 %v496_v61  ;;  %v440_v11 = vrot.slane %v439_v8, 2 }
 0x1b8   :  { %2594 = vmatprep.subr.msk.bf16.mxu1 %vm568_vm5, %v554_v63 }
 0x1b9   :  { %v441_v12 = vadd.f32 %v440_v11, %v439_v8 }
 0x1bb   :  { %v442_v14 = vrot.slane %v441_v12, 1 }
 0x1bd   :  { %v443_v15 = vadd.f32 %v442_v14, %v441_v12 }
 0x1bf   :  { %vm456_vm6 = vcmp.gt.f32.partialorder %v443_v15, 0.0 }
 0x285   :  { %v2450_v44 = vpop.f32.mrb[0].mxu1 }
 0x286   :  { %v416_v45 = vpop.f32.mrb[1].mxu1  ;;  %vm446_vm3 = vcmp.gt.f32.partialorder %v2450_v44, 0.0 }
 0x287   :  { %2625 = vrsqrt.f32 %v416_v45  ;;  %v2451_v46 = vpop.f32.mrb[2].mxu1  ;;  %vm444_vm1 = vcmp.gt.f32.partialorder %v416_v45, 0.0 }
 0x288   :  { %2627 = vrsqrt.f32 %v2450_v44  ;;  %v419_v47 = vpop.f32.mrb[3].mxu1  ;;  %vm447_vm4 = vcmp.gt.f32.partialorder %v2451_v46, 0.0 }
 0x289   :  { %2629 = vrsqrt.f32 %v419_v47  ;;  %vm445_vm2 = vcmp.gt.f32.partialorder %v419_v47, 0.0  ;;  %v627_v47 = vld [vmem:[%s3609_s5 + $0x10] sm:$0xff] }
 0x28a   :  { %2631 = vrsqrt.f32 %v2451_v46 }
 0x28b   :  { %2633 = vrsqrt.f32 %v443_v15 }
 0x291   :  { %v2626_v48 = vpop.eup %2625 }
 0x292   :  { %v2628_v49 = vpop.eup %2627  ;;  %v452_v50 = vsel %vm444_vm1, %v2626_v48, 0.0  ;;  %v628_v48 = vld [vmem:[%s3609_s5 + $0x18] sm:$0xff] }
 0x293   :  { %v2630_v51 = vpop.eup %2629  ;;  %461 = vperm.xlu0 %2623, %v452_v50   ;;  %v454_v56 = vsel %vm446_vm3, %v2628_v49, 0.0  ;;  %v666_v3 = vpack.c.bf16 %v628_v48, %v627_v47 }
 0x294   :  { %v453_v52 = vsel %vm445_vm2, %v2630_v51, 0.0  ;;  %v2632_v53 = vpop.eup %2631  ;;  %v631_v51 = vmul.f32 %v627_v47, %v627_v47 }
 0x295   :  { %466 = vperm.xlu1 %2624, %v453_v52   ;;  %v455_v58 = vsel %vm447_vm4, %v2632_v53, 0.0  ;;  %v2634_v17 = vpop.eup %2633  ;;  %v632_v52 = vmul.f32 %v628_v48, %v628_v48 }
 0x296   :  { %v458_v28 = vsel %vm456_vm6, %v2634_v17, 0.0  ;;  %v637_v55 = vsel %vm3630_vm7, %v631_v51, 0.0 }
 0x297   :  { %471 = vperm.xlu0 %2623, %v454_v56   ;;  %v639_v57 = vsel %vm3630_vm7, %v632_v52, 0.0 }
 0x299   :  { %476 = vperm.xlu1 %2624, %v455_v58  }
 0x312   :  { %v462_v16 = vpop.permute.xlu0 %461 }
 0x313   :  { %v479_v18 = vmul.f32 %v462_v16, %v3011_v25 }
 0x314   :  { %v467_v20 = vpop.permute.xlu1 %466 }
 0x315   :  { %v480_v27 = vmul.f32 %v467_v20, %v3015_v26  ;;  %v483_v30 = vmul.f32 %v479_v18, %v458_v28  ;;  %v570_v26 = vsel %vm568_vm5, %v554_v63, 0  ;;  %vm780_vm5 = vcmp.lt.s32.totalorder %v2922_v42, %v2903_v34 }
 0x316   :  { %v472_v29 = vpop.permute.xlu0 %471 }
 0x317   :  { %v484_v31 = vmul.f32 %v480_v27, %v458_v28  ;;  %v481_v32 = vmul.f32 %v472_v29, %v3036_v40  ;;  %v625_v40 = vld [vmem:[%s3609_s5] sm:$0xff] }
 0x318   :  { %v477_v35 = vpop.permute.xlu1 %476  ;;  %v629_v49 = vmul.f32 %v625_v40, %v625_v40  ;;  %v2301_v27 = vld [vmem:[%s3610_s4] ss:$0 sm:$0xff] }
 0x319   :  { %v3072_v43 = vpack.c.bf16 %v484_v31, %v483_v30  ;;  %v482_v44 = vmul.f32 %v477_v35, %v3040_v41  ;;  %v485_v45 = vmul.f32 %v481_v32, %v458_v28  ;;  %v626_v41 = vld [vmem:[%s3609_s5 + $0x8] sm:$0xff] }
 0x31a   :  { %v630_v50 = vmul.f32 %v626_v41, %v626_v41  ;;  %v634_v53 = vsel %vm3630_vm7, %v629_v49, 0.0  ;;  %v665_v2 = vpack.c.bf16 %v626_v41, %v625_v40 }
 0x31b   :  { %v486_v46 = vmul.f32 %v482_v44, %v458_v28  ;;  %2456 = vmatprep.mubr.msk.bf16.mxu1 %vm375_vm0, %v3072_v43 }
 0x31c   :  { %v635_v54 = vsel %vm3630_vm7, %v630_v50, 0.0 }
 0x31d   :  { %v3077_v25 = vpack.c.bf16 %v486_v46, %v485_v45  ;;  %v636_v56 = vadd.f32 %v635_v54, %v634_v53 }
 0x31f   :  { %2457 = vmatmul.mubr.msk.bf16.vlgmr.msra.gmra.mrb[4].mxu1 %vm375_vm0, %v3077_v25  ;;  %v638_v58 = vadd.f32 %v637_v55, %v636_v56 }
 0x320   :  { %2461 = vmatpush3.bf16.msra.mxu1 %v570_v26 }
 0x321   :  { %v640_v59 = vadd.f32 %v639_v57, %v638_v58  ;;  %2466 = vmatprep.subr.bf16.mxu1 %v665_v2 }
 0x323   :  { %641 = vadd.xlane.f32.xlu0 %v640_v59 }
 0x3b0   :  { %v642_v4 = vpop.xlane.xlu0 %641 }
 0x3b1   :  { %v643_v5 = vrot.slane %v642_v4, 4 }
 0x3b3   :  { %v644_v6 = vadd.f32 %v643_v5, %v642_v4 }
 0x3b5   :  { %v645_v7 = vrot.slane %v644_v6, 2 }
 0x3b7   :  { %v646_v8 = vadd.f32 %v645_v7, %v644_v6 }
 0x3b9   :  { %v647_v11 = vrot.slane %v646_v8, 1 }
 0x3bb   :  { %v648_v12 = vadd.f32 %v647_v11, %v646_v8 }
 0x3bd   :  { %2595 = vpush %v648_v12 }
 0x3ee   :  { %s2596_s5 = spop %2595 }
 0x3ef   :  { %v650_v14 = vstv %s2596_s5 }
 0x3f0   :  { %2635 = vrsqrt.f32 %v650_v14  ;;  %vm653_vm9 = vcmp.eq.f32.partialorder %v650_v14, inf  ;;  %v656_v16 = vand.u32 2147483648, %v650_v14  ;;  %vm655_vm10 = vcmp.eq.f32.partialorder %v650_v14, 0.0 }
 0x3f2   :  { %v2458_v60 = vpop.f32.mrb[4].mxu1 }
 0x3f3   :  { %v537_v61 = vpop.f32.mrb[5].mxu1 }
 0x3f4   :  { %v2459_v62 = vpop.f32.mrb[6].mxu1 }
 0x3f5   :  { %v553_v63 = vpack.c.bf16 %v2459_v62, %v2458_v60  ;;  %v540_v0 = vpop.f32.mrb[7].mxu1  ;;  %v978_v62 = vld [vmem:[%s3611_s6] sm:$0xff] }
 0x3f6   :  { %v552_v1 = vpack.c.bf16 %v540_v0, %v537_v61 }
 0x3f8   :  { %2462 = vmatprep.mubr.msk.bf16.mxu1 %vm3627_vm8, %v552_v1 }
 0x3f9   :  { %2463 = vmatmul.mubr.msk.bf16.vlgmr.msra.gmra.mrb[8].mxu1 %vm3627_vm8, %v553_v63  ;;  %v979_v63 = vld [vmem:[%s3611_s6 + $0x8] sm:$0xff] }
 0x3fa   :  { %2467 = vmatpush3.bf16.msra.mxu1 %v665_v2  ;;  %v2636_v15 = vpop.eup %2635  ;;  %v985_v1 = vpack.c.bf16 %v979_v63, %v978_v62  ;;  %v980_v2 = vld [vmem:[%s3611_s6 + $0x10] sm:$0xff] }
 0x3fb   :  { %2468 = vmatprep.subr.bf16.mxu1 %v666_v3  ;;  %v652_v17 = vmul.f32 %v2636_v15, %v650_v14 }
 0x3fc   :  { %2482 = vmatprep.subr.bf16.mxu0 %v985_v1 }
 0x3fd   :  { %v654_v18 = vsel %vm653_vm9, %v650_v14, %v652_v17  ;;  %2483 = vmatpush3.bf16.msra.mxu0 %v985_v1 }
 0x3fe   :  { %2469 = vmatpush3.bf16.msra.mxu1 %v666_v3  ;;  %v657_v20 = vsel %vm655_vm10, %v656_v16, %v654_v18  ;;  %v981_v3 = vld [vmem:[%s3611_s6 + $0x18] sm:$0xff] }
 0x3ff   :  { %2474 = vmatprep.subr.bf16.mxu1 %v2705_v13  ;;  %2597 = vpush %v657_v20  ;;  %v986_v5 = vpack.c.bf16 %v981_v3, %v980_v2 }
 0x401   :  { %2484 = vmatprep.subr.bf16.mxu0 %v986_v5 }
 0x402   :  { %2485 = vmatpush3.bf16.msra.mxu0 %v986_v5 }
 0x430   :  { %s2598_s0 = spop %2597 }
 0x431   :  { %s659_s4 = sadd.f32 1e-16, %s2598_s0 }
 0x433   :  { %v660_v49 = vstv %s659_s4 }
 0x434   :  { %2637 = vrcp.f32 %v660_v49 }
 0x43e   :  { %v2638_v50 = vpop.eup %2637 }
 0x43f   :  { %2599 = vpush %v2638_v50 }
 0x470   :  { %s2600_s22 = spop %2599 }
 0x471   :  { %v722_v51 = vstv %s2600_s22 }
 0x4cc   :  { %v2464_v28 = vpop.f32.mrb[8].mxu1 }
 0x4cd   :  { %v606_v29 = vpop.f32.mrb[9].mxu1  ;;  %v3104_v32 = vadd.f32 %v2464_v28, %v2301_v27 }
 0x4ce   :  { %v607_v30 = vadd.f32 %v2301_v27, %v606_v29  ;;  %v2465_v31 = vpop.f32.mrb[10].mxu1 }
 0x4cf   :  { %v3106_v35 = vadd.f32 %v2465_v31, %v2301_v27  ;;  %v609_v44 = vpop.f32.mrb[11].mxu1  ;;  %v623_v41 = vmax.f32 %v3104_v32, 0.0 }
 0x4d0   :  { %v610_v45 = vadd.f32 %v2301_v27, %v609_v44  ;;  %v621_v26 = vmax.f32 %v607_v30, 0.0 }
 0x4d1   :  { %v624_v46 = vmax.f32 %v3106_v35, 0.0 }
 0x4d2   :  { %v622_v40 = vmax.f32 %v610_v45, 0.0 }
 0x4d3   :  { %v664_v48 = vpack.c.bf16 %v624_v46, %v623_v41 }
 0x4d4   :  { %v663_v47 = vpack.c.bf16 %v622_v40, %v621_v26 }
 0x4d6   :  { %2470 = vmatprep.mubr.msk.bf16.mxu1 %vm375_vm0, %v663_v47 }
 0x4d7   :  { %2471 = vmatmul.mubr.msk.bf16.vlgmr.msra.gmra.mrb[12].mxu1 %vm375_vm0, %v664_v48 }
 0x4d8   :  { %2475 = vmatpush3.bf16.msra.mxu1 %v2705_v13 }
 0x4d9   :  { %2476 = vmatprep.subr.bf16.mxu1 %v2705_v13 }
 0x4dc   :  { %2477 = vmatpush3.bf16.msra.mxu1 %v2705_v13 }
 0x5aa   :  { %v2472_v52 = vpop.f32.mrb[12].mxu1 }
 0x5ab   :  { %v725_v53 = vmul.f32 %v2472_v52, %v722_v51  ;;  %v707_v54 = vpop.f32.mrb[13].mxu1 }
 0x5ac   :  { %v2473_v55 = vpop.f32.mrb[14].mxu1  ;;  %v723_v56 = vmul.f32 %v722_v51, %v707_v54 }
 0x5ad   :  { %2639 = vtanh.f32 %v725_v53  ;;  %v710_v57 = vpop.f32.mrb[15].mxu1  ;;  %v726_v59 = vmul.f32 %v2473_v55, %v722_v51 }
 0x5ae   :  { %2641 = vtanh.f32 %v723_v56  ;;  %v724_v58 = vmul.f32 %v722_v51, %v710_v57 }
 0x5b0   :  { %2643 = vtanh.f32 %v724_v58 }
 0x5b1   :  { %2645 = vtanh.f32 %v726_v59 }
 0x5b7   :  { %v2640_v60 = vpop.eup %2639 }
 0x5b8   :  { %743 = vperm.xlu1 %2624, %v2640_v60   ;;  %v2642_v61 = vpop.eup %2641 }
 0x5ba   :  { %v2644_v0 = vpop.eup %2643 }
 0x5bb   :  { %v2646_v4 = vpop.eup %2645 }
 0x5bc   :  { %733 = vperm.xlu1 %2624, %v2642_v61  }
 0x5c0   :  { %738 = vperm.xlu1 %2624, %v2644_v0  }
 0x5c4   :  { %748 = vperm.xlu1 %2624, %v2646_v4  }
 0x637   :  { %v3129_v6 = vpop.permute.xlu1 %743 }
 0x638   :  { %v757_v12 = vmul.f32 %v3129_v6, %v3027_v36  ;;  %v753_v29 = vmul.f32 %v3129_v6, %v623_v41 }
 0x63a   :  { %v762_v30 = vsel %vm375_vm0, %v757_v12, 0.0 }
 0x63b   :  { %v734_v7 = vpop.permute.xlu1 %733 }
 0x63c   :  { %v755_v8 = vmul.f32 %v734_v7, %v3002_v22  ;;  %v751_v14 = vmul.f32 %v734_v7, %v621_v26 }
 0x63e   :  { %v759_v17 = vsel %vm375_vm0, %v755_v8, 0.0 }
 0x63f   :  { %v739_v11 = vpop.permute.xlu1 %738 }
 0x640   :  { %v752_v15 = vmul.f32 %v739_v11, %v622_v40  ;;  %v756_v16 = vmul.f32 %v739_v11, %v3005_v23 }
 0x642   :  { %v760_v18 = vsel %vm375_vm0, %v756_v16, 0.0  ;;  %v983_v20 = vpack.c.bf16 %v752_v15, %v751_v14 }
 0x643   :  { %v761_v27 = vadd.f32 %v760_v18, %v759_v17  ;;  %v3137_v28 = vpop.permute.xlu1 %748 }
 0x644   :  { %v754_v31 = vmul.f32 %v3137_v28, %v624_v46  ;;  %v758_v32 = vmul.f32 %v3137_v28, %v3030_v38  ;;  %2486 = vmatprep.mubr.msk.bf16.mxu0 %vm375_vm0, %v983_v20 }
 0x645   :  { %v763_v44 = vadd.f32 %v762_v30, %v761_v27 }
 0x646   :  { %v764_v45 = vsel %vm375_vm0, %v758_v32, 0.0  ;;  %v984_v26 = vpack.c.bf16 %v754_v31, %v753_v29 }
 0x647   :  { %v765_v40 = vadd.f32 %v764_v45, %v763_v44 }
 0x648   :  { %2487 = vmatmul.mubr.msk.bf16.vlgmr.msra.gmra.mrb[8].mxu0 %vm375_vm0, %v984_v26 }
 0x649   :  { %v766_v47 = vrot.slane %v765_v40, 4 }
 0x64b   :  { %v767_v41 = vadd.f32 %v766_v47, %v765_v40 }
 0x64d   :  { %v768_v48 = vrot.slane %v767_v41, 2 }
 0x64f   :  { %v769_v49 = vadd.f32 %v768_v48, %v767_v41 }
 0x651   :  { %v770_v50 = vrot.slane %v769_v49, 1 }
 0x653   :  { %v771_v35 = vadd.f32 %v770_v50, %v769_v49 }
 0x655   :  { %vm773_vm12 = vcmp.eq.f32.partialorder %v771_v35, %v739_v11  ;;  %vm777_vm13 = vcmp.gt.f32.partialorder %v771_v35, %v739_v11  ;;  %vm797_vm14 = vcmp.gt.f32.partialorder %v739_v11, %v771_v35  ;;  %vm796_vm2 = vcmp.gt.f32.partialorder %v734_v7, %v771_v35 }
 0x656   :  { %vm785_vm1 = vmand %vm773_vm12, %vm3628_vm11  ;;  %vm772_vm4 = vcmp.eq.f32.partialorder %v771_v35, %v734_v7  ;;  %vm798_vm6 = vcmp.gt.f32.partialorder %v3129_v6, %v771_v35  ;;  %vm776_vm10 = vcmp.gt.f32.partialorder %v771_v35, %v734_v7  ;;  %vm800_vm11 = vcmp.lt.s32.totalorder %v2903_v34, %v2922_v42 }
 0x657   :  { %vm789_vm3 = vmor %vm777_vm13, %vm785_vm1 }
 0x658   :  { %v793_v46 = vsel %vm789_vm3, 1.0, %v2706_v21  ;;  %vm805_vm9 = vmand %vm773_vm12, %vm801_vm15  ;;  %vm774_vm3 = vcmp.eq.f32.partialorder %v771_v35, %v3129_v6  ;;  %vm3629_vm12 = vcmp.lt.s32.totalorder %v2922_v42, %v2971_v9 }
 0x659   :  { %vm809_vm8 = vmor %vm797_vm14, %vm805_vm9  ;;  %v819_v51 = vsel %vm375_vm0, %v793_v46, 0.0 }
 0x65a   :  { %v813_v52 = vsel %vm809_vm8, 1.0, %v2706_v21  ;;  %820 = vadd.xlane.f32.xlu0 %v819_v51  ;;  %vm784_vm13 = vmand %vm772_vm4, %vm780_vm5  ;;  %vm778_vm8 = vcmp.gt.f32.partialorder %v771_v35, %v3129_v6 }
 0x65b   :  { %vm788_vm1 = vmor %vm776_vm10, %vm784_vm13  ;;  %v829_v54 = vsel %vm375_vm0, %v813_v52, 0.0  ;;  %vm3633_vm10 = vcmp.lt.s32.totalorder %v2971_v9, %v2922_v42 }
 0x65c   :  { %v792_v53 = vsel %vm788_vm1, 1.0, %v2706_v21  ;;  %vm804_vm14 = vmand %vm772_vm4, %vm800_vm11  ;;  %vm775_vm1 = vcmp.eq.f32.partialorder %v771_v35, %v3137_v28 }
 0x65d   :  { %vm808_vm9 = vmor %vm796_vm2, %vm804_vm14  ;;  %v816_v55 = vsel %vm375_vm0, %v792_v53, 0.0  ;;  %vm3632_vm2 = vcmp.lt.s32.totalorder %v2922_v42, %v2974_v10 }
 0x65e   :  { %v812_v56 = vsel %vm808_vm9, 1.0, %v2706_v21  ;;  %817 = vadd.xlane.f32.xlu1 %v816_v55  ;;  %vm786_vm4 = vmand %vm774_vm3, %vm3629_vm12  ;;  %vm779_vm9 = vcmp.gt.f32.partialorder %v771_v35, %v3137_v28 }
 0x65f   :  { %v828_v57 = vsel %vm375_vm0, %v812_v56, 0.0  ;;  %vm790_vm13 = vmor %vm778_vm8, %vm786_vm4  ;;  %vm3631_vm8 = vcmp.lt.s32.totalorder %v2974_v10, %v2922_v42 }
 0x660   :  { %v830_v58 = vadd.f32 %v829_v54, %v828_v57  ;;  %v794_v59 = vsel %vm790_vm13, 1.0, %v2706_v21  ;;  %vm806_vm14 = vmand %vm774_vm3, %vm3633_vm10  ;;  %vm799_vm3 = vcmp.gt.f32.partialorder %v3137_v28, %v771_v35 }
 0x661   :  { %vm810_vm12 = vmor %vm798_vm6, %vm806_vm14  ;;  %v822_v60 = vsel %vm375_vm0, %v794_v59, 0.0 }
 0x662   :  { %v814_v61 = vsel %vm810_vm12, 1.0, %v2706_v21  ;;  %823 = vadd.xlane.f32.xlu0 %v822_v60  ;;  %vm787_vm4 = vmand %vm775_vm1, %vm3632_vm2 }
 0x663   :  { %v831_v62 = vsel %vm375_vm0, %v814_v61, 0.0  ;;  %vm791_vm13 = vmor %vm779_vm9, %vm787_vm4 }
 0x664   :  { %v832_v63 = vadd.f32 %v831_v62, %v830_v58  ;;  %v795_v0 = vsel %vm791_vm13, 1.0, %v2706_v21  ;;  %vm807_vm6 = vmand %vm775_vm1, %vm3631_vm8 }
 0x665   :  { %vm811_vm12 = vmor %vm799_vm3, %vm807_vm6  ;;  %v825_v1 = vsel %vm375_vm0, %v795_v0, 0.0 }
 0x666   :  { %v815_v2 = vsel %vm811_vm12, 1.0, %v2706_v21  ;;  %826 = vadd.xlane.f32.xlu0 %v825_v1 }
 0x667   :  { %v833_v3 = vsel %vm375_vm0, %v815_v2, 0.0 }
 0x668   :  { %v834_v4 = vadd.f32 %v833_v3, %v832_v63 }
 0x66a   :  { %v835_v5 = vrot.slane %v834_v4, 4 }
 0x66c   :  { %v836_v6 = vadd.f32 %v835_v5, %v834_v4  ;;  %v1109_v5 = vld [vmem:[%s3612_s8] sm:$0xff] }
 0x66e   :  { %v837_v7 = vrot.slane %v836_v6, 2 }
 0x670   :  { %v838_v8 = vadd.f32 %v837_v7, %v836_v6  ;;  %v1110_v6 = vld [vmem:[%s3612_s8 + $0x8] sm:$0xff]  ;;  %v1113_v7 = vmul.f32 %v1109_v5, %v1109_v5 }
 0x672   :  { %v839_v11 = vrot.slane %v838_v8, 1 }
 0x674   :  { %v840_v12 = vadd.f32 %v839_v11, %v838_v8  ;;  %v1114_v8 = vmul.f32 %v1110_v6, %v1110_v6  ;;  %v1111_v11 = vld [vmem:[%s3612_s8 + $0x10] sm:$0xff] }
 0x676   :  { %vm849_vm9 = vcmp.lt.f32.partialorder %v840_v12, 16.0  ;;  %v1115_v12 = vmul.f32 %v1111_v11, %v1111_v11 }
 0x677   :  { %v850_v17 = vsel %vm849_vm9, 1.0, %v2706_v21 }
 0x6e7   :  { %v821_v14 = vpop.xlane.xlu0 %820 }
 0x6e8   :  { %vm842_vm14 = vcmp.lt.f32.partialorder %v821_v14, 16.0  ;;  %v1117_v14 = vsel %vm3630_vm7, %v1113_v7, 0.0 }
 0x6e9   :  { %v3225_v15 = vsel %vm842_vm14, 1.0, %v2706_v21 }
 0x6ea   :  { %v852_v16 = vmul.f32 %v3225_v15, %v3007_v24 }
 0x6eb   :  { %v818_v18 = vpop.xlane.xlu1 %817 }
 0x6ec   :  { %v856_v20 = vmul.f32 %v852_v16, %v850_v17  ;;  %vm841_vm1 = vcmp.lt.f32.partialorder %v818_v18, 16.0  ;;  %v1118_v16 = vsel %vm3630_vm7, %v1114_v8, 0.0 }
 0x6ed   :  { %v3231_v27 = vsel %vm841_vm1, 1.0, %v2706_v21  ;;  %v1119_v18 = vadd.f32 %v1118_v16, %v1117_v14 }
 0x6ee   :  { %v851_v28 = vmul.f32 %v3231_v27, %v2999_v19  ;;  %v3236_v30 = vadd.f32 %v856_v20, %v3005_v23 }
 0x6ef   :  { %v824_v29 = vpop.xlane.xlu0 %823 }
 0x6f0   :  { %v855_v31 = vmul.f32 %v851_v28, %v850_v17  ;;  %vm843_vm4 = vcmp.lt.f32.partialorder %v824_v29, 16.0  ;;  %v1120_v28 = vsel %vm3630_vm7, %v1115_v12, 0.0 }
 0x6f1   :  { %v3239_v32 = vsel %vm843_vm4, 1.0, %v2706_v21  ;;  %v1121_v29 = vadd.f32 %v1120_v28, %v1119_v18 }
 0x6f2   :  { %v3242_v44 = vadd.f32 %v855_v31, %v3002_v22  ;;  %v853_v45 = vmul.f32 %v3239_v32, %v3023_v33 }
 0x6f3   :  { %v827_v26 = vpop.xlane.xlu0 %826 }
 0x6f4   :  { %vm844_vm3 = vcmp.lt.f32.partialorder %v827_v26, 16.0  ;;  %v863_v40 = vpack.c.bf16 %v3236_v30, %v3242_v44  ;;  %v857_v41 = vmul.f32 %v853_v45, %v850_v17  ;;  %v921_v26 = vsel %vm375_vm0, %v3236_v30, 0.0 }
 0x6f5   :  { %v3249_v47 = vsel %vm844_vm3, 1.0, %v2706_v21  ;;  %vm1240_vm3 = vcmp.gt.f32.partialorder %v3239_v32, 0.0 }
 0x6f6   :  { %v854_v48 = vmul.f32 %v3249_v47, %v3032_v39  ;;  %2478 = vmatprep.mubr.msk.bf16.mxu1 %vm375_vm0, %v863_v40  ;;  %v3255_v50 = vadd.f32 %v857_v41, %v3027_v36  ;;  %v920_v40 = vsel %vm375_vm0, %v3242_v44, 0.0 }
 0x6f8   :  { %v858_v49 = vmul.f32 %v854_v48, %v850_v17  ;;  %v1112_v17 = vld [vmem:[%s3612_s8 + $0x18] sm:$0xff]  ;;  %v923_v41 = vsel %vm375_vm0, %v3255_v50, 0.0  ;;  %v922_v48 = vadd.f32 %v921_v26, %v920_v40 }
 0x6f9   :  { %v1116_v20 = vmul.f32 %v1112_v17, %v1112_v17 }
 0x6fa   :  { %v3258_v35 = vadd.f32 %v858_v49, %v3030_v38 }
 0x6fb   :  { %v1122_v31 = vsel %vm3630_vm7, %v1116_v20, 0.0 }
 0x6fc   :  { %v864_v46 = vpack.c.bf16 %v3258_v35, %v3255_v50  ;;  %v1123_v45 = vadd.f32 %v1122_v31, %v1121_v29  ;;  %v925_v49 = vsel %vm375_vm0, %v3258_v35, 0.0 }
 0x6fe   :  { %2479 = vmatmul.mubr.msk.bf16.vlgmr.msra.gmra.mrb[16].mxu1 %vm375_vm0, %v864_v46  ;;  %v924_v46 = vadd.f32 %v923_v41, %v922_v48 }
 0x71b   :  { %v2488_v51 = vpop.f32.mrb[8].mxu0 }
 0x71c   :  { %v1027_v52 = vpop.f32.mrb[9].mxu0 }
 0x71d   :  { %v2489_v53 = vpop.f32.mrb[10].mxu0 }
 0x71e   :  { %v1043_v54 = vpack.c.bf16 %v2489_v53, %v2488_v51  ;;  %v1030_v55 = vpop.f32.mrb[11].mxu0  ;;  %v926_v51 = vadd.f32 %v925_v49, %v924_v46 }
 0x71f   :  { %v1042_v56 = vpack.c.bf16 %v1030_v55, %v1027_v52 }
 0x720   :  { %v927_v52 = vrot.slane %v926_v51, 4 }
 0x721   :  { %2490 = vmatprep.subr.bf16.mxu1 %v1042_v56 }
 0x722   :  { %2491 = vmatpush3.bf16.msra.mxu1 %v1042_v56  ;;  %v928_v53 = vadd.f32 %v927_v52, %v926_v51 }
 0x723   :  { %2492 = vmatprep.subr.bf16.mxu1 %v1043_v54 }
 0x726   :  { %2493 = vmatpush3.bf16.msra.mxu1 %v1043_v54  ;;  %v929_v54 = vrot.slane %v928_v53, 2 }
 0x727   :  { %2506 = vmatprep.subr.bf16.mxu1 %v2705_v13 }
 0x728   :  { %v930_v55 = vadd.f32 %v929_v54, %v928_v53 }
 0x72a   :  { %v931_v56 = vrot.slane %v930_v55, 1 }
 0x7d1   :  { %v2480_v57 = vpop.f32.mrb[16].mxu1 }
 0x7d2   :  { %v905_v58 = vpop.f32.mrb[17].mxu1  ;;  %vm935_vm12 = vcmp.gt.f32.partialorder %v2480_v57, 0.0 }
 0x7d3   :  { %2647 = vrsqrt.f32 %v905_v58  ;;  %v2481_v59 = vpop.f32.mrb[18].mxu1  ;;  %vm933_vm13 = vcmp.gt.f32.partialorder %v905_v58, 0.0 }
 0x7d4   :  { %2649 = vrsqrt.f32 %v2480_v57  ;;  %v908_v60 = vpop.f32.mrb[19].mxu1  ;;  %vm936_vm14 = vcmp.gt.f32.partialorder %v2481_v59, 0.0  ;;  %v932_v57 = vadd.f32 %v931_v56, %v930_v55 }
 0x7d5   :  { %2651 = vrsqrt.f32 %v908_v60  ;;  %vm934_vm6 = vcmp.gt.f32.partialorder %v908_v60, 0.0 }
 0x7d6   :  { %2653 = vrsqrt.f32 %v2481_v59  ;;  %vm945_vm9 = vcmp.gt.f32.partialorder %v932_v57, 0.0 }
 0x7d7   :  { %2655 = vrsqrt.f32 %v932_v57 }
 0x7dd   :  { %v2648_v61 = vpop.eup %2647 }
 0x7de   :  { %v2650_v62 = vpop.eup %2649  ;;  %v941_v63 = vsel %vm933_vm13, %v2648_v61, 0.0  ;;  %vm1238_vm13 = vcmp.gt.f32.partialorder %v3231_v27, 0.0 }
 0x7df   :  { %v2652_v0 = vpop.eup %2651  ;;  %950 = vperm.xlu0 %2623, %v941_v63   ;;  %v943_v2 = vsel %vm935_vm12, %v2650_v62, 0.0  ;;  %vm1241_vm12 = vcmp.gt.f32.partialorder %v3249_v47, 0.0 }
 0x7e0   :  { %v942_v1 = vsel %vm934_vm6, %v2652_v0, 0.0  ;;  %v2654_v3 = vpop.eup %2653  ;;  %vm1239_vm6 = vcmp.gt.f32.partialorder %v3225_v15, 0.0 }
 0x7e1   :  { %955 = vperm.xlu1 %2624, %v942_v1   ;;  %v944_v4 = vsel %vm936_vm14, %v2654_v3, 0.0  ;;  %v2656_v59 = vpop.eup %2655 }
 0x7e2   :  { %v947_v63 = vsel %vm945_vm9, %v2656_v59, 0.0 }
 0x7e3   :  { %960 = vperm.xlu0 %2623, %v943_v2  }
 0x7e7   :  { %965 = vperm.xlu0 %2623, %v944_v4  }
 0x805   :  { %1124 = vadd.xlane.f32.xlu1 %v1123_v45 }
 0x85e   :  { %v951_v58 = vpop.permute.xlu0 %950 }
 0x85f   :  { %v968_v60 = vmul.f32 %v951_v58, %v3242_v44 }
 0x860   :  { %v956_v61 = vpop.permute.xlu1 %955 }
 0x861   :  { %v969_v62 = vmul.f32 %v956_v61, %v3236_v30  ;;  %v972_v1 = vmul.f32 %v968_v60, %v947_v63  ;;  %v1148_v30 = vpack.c.bf16 %v1110_v6, %v1109_v5 }
 0x862   :  { %v961_v0 = vpop.permute.xlu0 %960 }
 0x863   :  { %v973_v2 = vmul.f32 %v969_v62, %v947_v63  ;;  %v970_v4 = vmul.f32 %v961_v0, %v3255_v50  ;;  %v1149_v50 = vpack.c.bf16 %v1112_v17, %v1111_v11  ;;  %2498 = vmatprep.subr.bf16.mxu0 %v1148_v30  ;;  %v2310_v17 = vld [vmem:[%s3613_s7] ss:$0 sm:$0xff] }
 0x864   :  { %2499 = vmatpush3.bf16.msra.mxu0 %v1148_v30 }
 0x865   :  { %v3290_v3 = vpack.c.bf16 %v973_v2, %v972_v1  ;;  %v974_v12 = vmul.f32 %v970_v4, %v947_v63  ;;  %2500 = vmatprep.subr.bf16.mxu0 %v1149_v50 }
 0x866   :  { %v966_v7 = vpop.permute.xlu0 %965 }
 0x867   :  { %v971_v8 = vmul.f32 %v966_v7, %v3258_v35  ;;  %2494 = vmatprep.mubr.msk.bf16.mxu1 %vm375_vm0, %v3290_v3 }
 0x868   :  { %2501 = vmatpush3.bf16.msra.mxu0 %v1149_v50 }
 0x869   :  { %v975_v44 = vmul.f32 %v971_v8, %v947_v63 }
 0x86b   :  { %v3296_v14 = vpack.c.bf16 %v975_v44, %v974_v12 }
 0x86d   :  { %2495 = vmatmul.mubr.msk.bf16.vlgmr.msra.gmra.mrb[20].mxu1 %vm375_vm0, %v3296_v14 }
 0x86e   :  { %2507 = vmatpush3.bf16.msra.mxu1 %v2705_v13 }
 0x86f   :  { %2508 = vmatprep.subr.bf16.mxu1 %v2705_v13 }
 0x872   :  { %2509 = vmatpush3.bf16.msra.mxu1 %v2705_v13 }
 0x892   :  { %v1125_v16 = vpop.xlane.xlu1 %1124 }
 0x893   :  { %v1126_v35 = vrot.slane %v1125_v16, 4 }
 0x895   :  { %v1127_v18 = vadd.f32 %v1126_v35, %v1125_v16 }
 0x897   :  { %v1128_v20 = vrot.slane %v1127_v18, 2 }
 0x899   :  { %v1129_v28 = vadd.f32 %v1128_v20, %v1127_v18 }
 0x89b   :  { %v1130_v29 = vrot.slane %v1129_v28, 1 }
 0x89d   :  { %v1131_v31 = vadd.f32 %v1130_v29, %v1129_v28 }
 0x89f   :  { %2601 = vpush %v1131_v31 }
 0x8d0   :  { %s2602_s8 = spop %2601 }
 0x8d1   :  { %v1133_v45 = vstv %s2602_s8 }
 0x8d2   :  { %2657 = vrsqrt.f32 %v1133_v45  ;;  %vm1136_vm1 = vcmp.eq.f32.partialorder %v1133_v45, inf  ;;  %v1139_v13 = vand.u32 2147483648, %v1133_v45  ;;  %vm1138_vm4 = vcmp.eq.f32.partialorder %v1133_v45, 0.0 }
 0x8dc   :  { %v2658_v26 = vpop.eup %2657 }
 0x8dd   :  { %v1135_v5 = vmul.f32 %v2658_v26, %v1133_v45 }
 0x8df   :  { %v1137_v6 = vsel %vm1136_vm1, %v1133_v45, %v1135_v5 }
 0x8e0   :  { %v1140_v11 = vsel %vm1138_vm4, %v1139_v13, %v1137_v6  ;;  %vm3642_vm4 = vcmp.lt.s32.totalorder %v2922_v42, %v2912_v37 }
 0x8e1   :  { %2603 = vpush %v1140_v11 }
 0x912   :  { %s2604_s7 = spop %2603 }
 0x913   :  { %s1142_s2 = sadd.f32 1e-16, %s2604_s7 }
 0x915   :  { %v1143_v60 = vstv %s1142_s2 }
 0x916   :  { %2659 = vrcp.f32 %v1143_v60 }
 0x920   :  { %v2660_v61 = vpop.eup %2659 }
 0x921   :  { %2605 = vpush %v2660_v61 }
 0x940   :  { %v2496_v40 = vpop.f32.mrb[20].mxu1 }
 0x941   :  { %v1090_v41 = vpop.f32.mrb[21].mxu1  ;;  %v3308_v46 = vadd.f32 %v2496_v40, %v2310_v17 }
 0x942   :  { %v3306_v48 = vadd.f32 %v2310_v17, %v1090_v41  ;;  %v2497_v49 = vpop.f32.mrb[22].mxu1 }
 0x943   :  { %v3310_v51 = vadd.f32 %v2497_v49, %v2310_v17  ;;  %v1093_v52 = vpop.f32.mrb[23].mxu1  ;;  %v1107_v57 = vmax.f32 %v3308_v46, 0.0 }
 0x944   :  { %v3312_v53 = vadd.f32 %v2310_v17, %v1093_v52  ;;  %v1105_v55 = vmax.f32 %v3306_v48, 0.0 }
 0x945   :  { %v1108_v54 = vmax.f32 %v3310_v51, 0.0 }
 0x946   :  { %v1106_v56 = vmax.f32 %v3312_v53, 0.0 }
 0x947   :  { %v1147_v59 = vpack.c.bf16 %v1108_v54, %v1107_v57 }
 0x948   :  { %v1146_v58 = vpack.c.bf16 %v1106_v56, %v1105_v55 }
 0x94a   :  { %2502 = vmatprep.mubr.msk.bf16.mxu0 %vm375_vm0, %v1146_v58 }
 0x94b   :  { %2503 = vmatmul.mubr.msk.bf16.vlgmr.msra.gmra.mrb[12].mxu0 %vm375_vm0, %v1147_v59 }
 0x952   :  { %s2606_s23 = spop %2605 }
 0x953   :  { %v1205_v62 = vstv %s2606_s23 }
 0xa1e   :  { %v2504_v63 = vpop.f32.mrb[12].mxu0 }
 0xa1f   :  { %v1208_v0 = vmul.f32 %v2504_v63, %v1205_v62  ;;  %v1190_v1 = vpop.f32.mrb[13].mxu0 }
 0xa20   :  { %v1206_v2 = vmul.f32 %v1205_v62, %v1190_v1  ;;  %v2505_v4 = vpop.f32.mrb[14].mxu0 }
 0xa21   :  { %2661 = vtanh.f32 %v1208_v0  ;;  %v1193_v7 = vpop.f32.mrb[15].mxu0  ;;  %v1209_v12 = vmul.f32 %v2505_v4, %v1205_v62 }
 0xa22   :  { %2663 = vtanh.f32 %v1206_v2  ;;  %v1207_v8 = vmul.f32 %v1205_v62, %v1193_v7 }
 0xa24   :  { %2665 = vtanh.f32 %v1207_v8 }
 0xa25   :  { %2667 = vtanh.f32 %v1209_v12 }
 0xa2b   :  { %v3328_v44 = vpop.eup %2661 }
 0xa2c   :  { %v1244_v30 = vsel %vm1240_vm3, %v3328_v44, -1e+09  ;;  %v3332_v50 = vpop.eup %2663 }
 0xa2d   :  { %1258 = vperm.xlu0 %2623, %v1244_v30   ;;  %v1242_v16 = vsel %vm1238_vm13, %v3332_v50, -1e+09 }
 0xa2e   :  { %v3336_v35 = vpop.eup %2665 }
 0xa2f   :  { %v1243_v18 = vsel %vm1239_vm6, %v3336_v35, -1e+09  ;;  %v3340_v20 = vpop.eup %2667 }
 0xa30   :  { %v1245_v28 = vsel %vm1241_vm12, %v3340_v20, -1e+09 }
 0xa31   :  { %1248 = vperm.xlu0 %2623, %v1242_v16  }
 0xa35   :  { %1253 = vperm.xlu0 %2623, %v1243_v18  }
 0xa39   :  { %1263 = vperm.xlu0 %2623, %v1245_v28  }
 0xaac   :  { %v1259_v29 = vpop.permute.xlu0 %1258 }
 0xaad   :  { %v1268_v13 = vmul.f32 %v1259_v29, %v3027_v36 }
 0xaaf   :  { %v1273_v41 = vsel %vm375_vm0, %v1268_v13, 0.0 }
 0xab0   :  { %v1249_v31 = vpop.permute.xlu0 %1248 }
 0xab1   :  { %v1266_v45 = vmul.f32 %v1249_v31, %v3002_v22 }
 0xab3   :  { %v1270_v6 = vsel %vm375_vm0, %v1266_v45, 0.0 }
 0xab4   :  { %v1254_v26 = vpop.permute.xlu0 %1253 }
 0xab5   :  { %v1267_v5 = vmul.f32 %v1254_v26, %v3005_v23 }
 0xab7   :  { %v1271_v11 = vsel %vm375_vm0, %v1267_v5, 0.0 }
 0xab8   :  { %v1272_v17 = vadd.f32 %v1271_v11, %v1270_v6  ;;  %v1264_v40 = vpop.permute.xlu0 %1263 }
 0xab9   :  { %v1269_v49 = vmul.f32 %v1264_v40, %v3030_v38 }
 0xaba   :  { %v1274_v52 = vadd.f32 %v1273_v41, %v1272_v17  ;;  %v1483_v17 = vld [vmem:[%s3614_s9 + $0x10] sm:$0xff] }
 0xabb   :  { %v1275_v58 = vsel %vm375_vm0, %v1269_v49, 0.0 }
 0xabc   :  { %v1276_v59 = vadd.f32 %v1275_v58, %v1274_v52 }
 0xabe   :  { %v1277_v60 = vrot.slane %v1276_v59, 4 }
 0xac0   :  { %v1278_v61 = vadd.f32 %v1277_v60, %v1276_v59 }
 0xac2   :  { %v1279_v62 = vrot.slane %v1278_v61, 2 }
 0xac4   :  { %v1280_v63 = vadd.f32 %v1279_v62, %v1278_v61 }
 0xac6   :  { %v1281_v0 = vrot.slane %v1280_v63, 1 }
 0xac8   :  { %v1282_v1 = vadd.f32 %v1281_v0, %v1280_v63 }
 0xaca   :  { %vm1284_vm14 = vcmp.eq.f32.partialorder %v1282_v1, %v1254_v26  ;;  %vm1288_vm9 = vcmp.gt.f32.partialorder %v1282_v1, %v1254_v26  ;;  %vm1304_vm1 = vcmp.gt.f32.partialorder %v1254_v26, %v1282_v1  ;;  %vm1303_vm13 = vcmp.gt.f32.partialorder %v1249_v31, %v1282_v1 }
 0xacb   :  { %vm1292_vm3 = vmand %vm1284_vm14, %vm3642_vm4  ;;  %vm1283_vm12 = vcmp.eq.f32.partialorder %v1282_v1, %v1249_v31  ;;  %vm1305_vm7 = vcmp.gt.f32.partialorder %v1259_v29, %v1282_v1  ;;  %vm1287_vm2 = vcmp.gt.f32.partialorder %v1282_v1, %v1249_v31 }
 0xacc   :  { %vm1296_vm6 = vmor %vm1288_vm9, %vm1292_vm3  ;;  %vm1285_vm3 = vcmp.eq.f32.partialorder %v1282_v1, %v1259_v29 }
 0xacd   :  { %v1300_v2 = vsel %vm1296_vm6, 1.0, %v2706_v21  ;;  %vm1308_vm8 = vmand %vm1284_vm14, %vm801_vm15  ;;  %vm1289_vm15 = vcmp.gt.f32.partialorder %v1282_v1, %v1259_v29  ;;  %vm1286_vm14 = vcmp.eq.f32.partialorder %v1282_v1, %v1264_v40 }
 0xace   :  { %vm1312_vm10 = vmor %vm1304_vm1, %vm1308_vm8  ;;  %v1322_v4 = vsel %vm375_vm0, %v1300_v2, 0.0 }
 0xacf   :  { %v1316_v7 = vsel %vm1312_vm10, 1.0, %v2706_v21  ;;  %1323 = vadd.xlane.f32.xlu1 %v1322_v4  ;;  %vm1291_vm4 = vmand %vm1283_vm12, %vm780_vm5  ;;  %vm3643_vm5 = vcmp.lt.s32.totalorder %v2922_v42, %v2971_v9 }
 0xad0   :  { %vm1295_vm9 = vmor %vm1287_vm2, %vm1291_vm4  ;;  %v1332_v37 = vsel %vm375_vm0, %v1316_v7, 0.0  ;;  %vm1306_vm4 = vcmp.gt.f32.partialorder %v1264_v40, %v1282_v1 }
 0xad1   :  { %v1299_v8 = vsel %vm1295_vm9, 1.0, %v2706_v21  ;;  %vm1307_vm6 = vmand %vm1283_vm12, %vm800_vm11  ;;  %vm3644_vm11 = vcmp.lt.s32.totalorder %v2971_v9, %v2922_v42  ;;  %vm3645_vm9 = vcmp.lt.s32.totalorder %v2922_v42, %v2974_v10 }
 0xad2   :  { %vm1311_vm8 = vmor %vm1303_vm13, %vm1307_vm6  ;;  %v1319_v12 = vsel %vm375_vm0, %v1299_v8, 0.0  ;;  %vm1290_vm13 = vcmp.gt.f32.partialorder %v1282_v1, %v1264_v40 }
 0xad3   :  { %v1315_v30 = vsel %vm1311_vm8, 1.0, %v2706_v21  ;;  %1320 = vadd.xlane.f32.xlu0 %v1319_v12  ;;  %vm1293_vm10 = vmand %vm1285_vm3, %vm3643_vm5 }
 0xad4   :  { %v1331_v16 = vsel %vm375_vm0, %v1315_v30, 0.0  ;;  %vm1297_vm2 = vmor %vm1289_vm15, %vm1293_vm10 }
 0xad5   :  { %v1333_v34 = vadd.f32 %v1332_v37, %v1331_v16  ;;  %v1301_v18 = vsel %vm1297_vm2, 1.0, %v2706_v21  ;;  %vm1309_vm1 = vmand %vm1285_vm3, %vm3644_vm11 }
 0xad6   :  { %vm1313_vm12 = vmor %vm1305_vm7, %vm1309_vm1  ;;  %v1325_v28 = vsel %vm375_vm0, %v1301_v18, 0.0  ;;  %vm3646_vm7 = vcmp.lt.s32.totalorder %v2974_v10, %v2922_v42  ;;  %v1481_v42 = vld [vmem:[%s3614_s9] sm:$0xff]  ;;  %v1482_v10 = vld [vmem:[%s3614_s9 + $0x8] sm:$0xff] }
 0xad7   :  { %v1317_v31 = vsel %vm1313_vm12, 1.0, %v2706_v21  ;;  %1326 = vadd.xlane.f32.xlu1 %v1325_v28  ;;  %vm1294_vm6 = vmand %vm1286_vm14, %vm3645_vm9  ;;  %v1488_v11 = vpack.c.bf16 %v1482_v10, %v1481_v42  ;;  %vm3647_vm9 = vcmask 7168  }
 0xad8   :  { %v1334_v45 = vsel %vm375_vm0, %v1317_v31, 0.0  ;;  %vm1298_vm15 = vmor %vm1290_vm13, %vm1294_vm6 }
 0xad9   :  { %v1335_v9 = vadd.f32 %v1334_v45, %v1333_v34  ;;  %v1302_v26 = vsel %vm1298_vm15, 1.0, %v2706_v21  ;;  %vm1310_vm3 = vmand %vm1286_vm14, %vm3646_vm7  ;;  %2514 = vmatprep.subr.bf16.mxu0 %v1488_v11 }
 0xada   :  { %vm1314_vm8 = vmor %vm1306_vm4, %vm1310_vm3  ;;  %v1328_v29 = vsel %vm375_vm0, %v1302_v26, 0.0  ;;  %2515 = vmatpush3.bf16.msra.mxu0 %v1488_v11 }
 0xadb   :  { %v1318_v13 = vsel %vm1314_vm8, 1.0, %v2706_v21  ;;  %1329 = vadd.xlane.f32.xlu1 %v1328_v29  ;;  %vm3648_vm6 = vmmov %vm3647_vm9 }
 0xadc   :  { %v1336_v5 = vsel %vm375_vm0, %v1318_v13, 0.0  ;;  %vm3649_vm15 = vmmov %vm3648_vm6 }
 0xadd   :  { %v1337_v6 = vadd.f32 %v1336_v5, %v1335_v9  ;;  %vm3650_vm7 = vmmov %vm3648_vm6 }
 0xae9   :  { %1221 = vperm.xlu0 %2623, %v3336_v35   ;;  %v1338_v35 = vrot.slane %v1337_v6, 4 }
 0xaec   :  { %1216 = vperm.xlu1 %2624, %v3332_v50   ;;  %v1484_v50 = vld [vmem:[%s3614_s9 + $0x18] sm:$0xff] }
 0xaf0   :  { %1226 = vperm.xlu1 %2624, %v3328_v44   ;;  %v1489_v44 = vpack.c.bf16 %v1484_v50, %v1483_v17 }
 0xaf2   :  { %2516 = vmatprep.subr.bf16.mxu0 %v1489_v44 }
 0xaf3   :  { %2517 = vmatpush3.bf16.msra.mxu0 %v1489_v44 }
 0xaf4   :  { %1231 = vperm.xlu1 %2624, %v3340_v20   ;;  %v1339_v20 = vadd.f32 %v1338_v35, %v1337_v6 }
 0xaf6   :  { %v1340_v40 = vrot.slane %v1339_v20, 2 }
 0xaf8   :  { %v1341_v41 = vadd.f32 %v1340_v40, %v1339_v20  ;;  %v1612_v20 = vld [vmem:[%s3615_s11] sm:$0xff]  ;;  %v1613_v40 = vld [vmem:[%s3615_s11 + $0x8] sm:$0xff] }
 0xafa   :  { %v1342_v49 = vrot.slane %v1341_v41, 1 }
 0xafc   :  { %v1343_v52 = vadd.f32 %v1342_v49, %v1341_v41  ;;  %v1616_v41 = vmul.f32 %v1612_v20, %v1612_v20  ;;  %v1617_v49 = vmul.f32 %v1613_v40, %v1613_v40 }
 0xafe   :  { %vm1352_vm10 = vcmp.lt.f32.partialorder %v1343_v52, 8.0  ;;  %v1614_v52 = vld [vmem:[%s3615_s11 + $0x10] sm:$0xff] }
 0xaff   :  { %v1353_v62 = vsel %vm1352_vm10, 1.0, %v2706_v21  ;;  %vm3651_vm10 = vmmov %vm3648_vm6 }
 0xb5c   :  { %v1324_v58 = vpop.xlane.xlu1 %1323 }
 0xb5d   :  { %vm1345_vm5 = vcmp.lt.f32.partialorder %v1324_v58, 8.0  ;;  %v1618_v58 = vmul.f32 %v1614_v52, %v1614_v52 }
 0xb5e   :  { %v3415_v59 = vsel %vm1345_vm5, 1.0, %v2706_v21 }
 0xb5f   :  { %v1355_v60 = vmul.f32 %v3415_v59, %v3007_v24 }
 0xb60   :  { %v1321_v61 = vpop.xlane.xlu0 %1320 }
 0xb61   :  { %vm1344_vm2 = vcmp.lt.f32.partialorder %v1321_v61, 8.0  ;;  %v1359_v63 = vmul.f32 %v1355_v60, %v1353_v62  ;;  %v1620_v60 = vsel %vm3647_vm9, %v1616_v41, 0.0  ;;  %v1621_v61 = vsel %vm3648_vm6, %v1617_v49, 0.0 }
 0xb62   :  { %v3421_v0 = vsel %vm1344_vm2, 1.0, %v2706_v21  ;;  %vm3652_vm2 = vmmov %vm3648_vm6 }
 0xb63   :  { %v1354_v1 = vmul.f32 %v3421_v0, %v2999_v19  ;;  %v3426_v7 = vadd.f32 %v1359_v63, %v3005_v23  ;;  %v1622_v63 = vadd.f32 %v1621_v61, %v1620_v60  ;;  %v2319_v61 = vld [vmem:[%s3616_s10] ss:$0 sm:$0xff] }
 0xb64   :  { %v1327_v2 = vpop.xlane.xlu1 %1326 }
 0xb65   :  { %v1358_v4 = vmul.f32 %v1354_v1, %v1353_v62  ;;  %vm1346_vm14 = vcmp.lt.f32.partialorder %v1327_v2, 8.0  ;;  %v1623_v2 = vsel %vm3649_vm15, %v1618_v58, 0.0 }
 0xb66   :  { %v3429_v8 = vsel %vm1346_vm14, 1.0, %v2706_v21  ;;  %vm3653_vm14 = vmmov %vm3652_vm2 }
 0xb67   :  { %v3432_v24 = vadd.f32 %v1358_v4, %v3002_v22  ;;  %v1356_v37 = vmul.f32 %v3429_v8, %v3023_v33  ;;  %v1624_v4 = vadd.f32 %v1623_v2, %v1622_v63 }
 0xb68   :  { %v1330_v12 = vpop.xlane.xlu1 %1329  ;;  %v1222_v19 = vpop.permute.xlu0 %1221 }
 0xb69   :  { %vm1347_vm11 = vcmp.lt.f32.partialorder %v1330_v12, 8.0  ;;  %v1366_v16 = vpack.c.bf16 %v3426_v7, %v3432_v24  ;;  %v1360_v23 = vmul.f32 %v1356_v37, %v1353_v62  ;;  %v1235_v33 = vmul.f32 %v1222_v19, %v1106_v56 }
 0xb6a   :  { %v3437_v30 = vsel %vm1347_vm11, 1.0, %v2706_v21  ;;  %v1424_v19 = vsel %vm375_vm0, %v3426_v7, 0.0  ;;  %vm3654_vm11 = vmmov %vm3652_vm2 }
 0xb6b   :  { %v1357_v34 = vmul.f32 %v3437_v30, %v3032_v39  ;;  %2510 = vmatprep.mubr.msk.bf16.mxu1 %vm375_vm0, %v1366_v16  ;;  %v3449_v21 = vadd.f32 %v1360_v23, %v3027_v36  ;;  %v1423_v16 = vsel %vm375_vm0, %v3432_v24, 0.0 }
 0xb6c   :  { %v1217_v22 = vpop.permute.xlu1 %1216 }
 0xb6d   :  { %v1361_v18 = vmul.f32 %v1357_v34, %v1353_v62  ;;  %v1234_v28 = vmul.f32 %v1217_v22, %v1105_v55  ;;  %v1615_v62 = vld [vmem:[%s3615_s11 + $0x18] sm:$0xff]  ;;  %v1426_v23 = vsel %vm375_vm0, %v3449_v21, 0.0  ;;  %v1425_v34 = vadd.f32 %v1424_v19, %v1423_v16 }
 0xb6e   :  { %v1619_v1 = vmul.f32 %v1615_v62, %v1615_v62 }
 0xb6f   :  { %v3452_v31 = vadd.f32 %v1361_v18, %v3030_v38  ;;  %v1486_v45 = vpack.c.bf16 %v1235_v33, %v1234_v28  ;;  %v1427_v18 = vadd.f32 %v1426_v23, %v1425_v34 }
 0xb70   :  { %v1227_v9 = vpop.permute.xlu1 %1226  ;;  %v1625_v37 = vsel %vm3650_vm7, %v1619_v1, 0.0 }
 0xb71   :  { %v1367_v39 = vpack.c.bf16 %v3452_v31, %v3449_v21  ;;  %2518 = vmatprep.mubr.msk.bf16.mxu0 %vm375_vm0, %v1486_v45  ;;  %v1236_v48 = vmul.f32 %v1227_v9, %v1107_v57  ;;  %v1626_v12 = vadd.f32 %v1625_v37, %v1624_v4  ;;  %v1428_v22 = vsel %vm375_vm0, %v3452_v31, 0.0 }
 0xb72   :  { %v1429_v33 = vadd.f32 %v1428_v22, %v1427_v18 }
 0xb73   :  { %2511 = vmatmul.mubr.msk.bf16.vlgmr.msra.gmra.mrb[24].mxu1 %vm375_vm0, %v1367_v39 }
 0xb74   :  { %v1232_v53 = vpop.permute.xlu1 %1231  ;;  %v1430_v28 = vrot.slane %v1429_v33, 4 }
 0xb75   :  { %v1237_v36 = vmul.f32 %v1232_v53, %v1108_v54 }
 0xb76   :  { %v1431_v45 = vadd.f32 %v1430_v28, %v1429_v33 }
 0xb77   :  { %v1487_v55 = vpack.c.bf16 %v1237_v36, %v1236_v48 }
 0xb78   :  { %v1432_v9 = vrot.slane %v1431_v45, 2 }
 0xb79   :  { %2519 = vmatmul.mubr.msk.bf16.vlgmr.msra.gmra.mrb[16].mxu0 %vm375_vm0, %v1487_v55 }
 0xb7a   :  { %v1433_v39 = vadd.f32 %v1432_v9, %v1431_v45 }
 0xb7c   :  { %v1434_v53 = vrot.slane %v1433_v39, 1 }
 0xb7e   :  { %v1435_v48 = vadd.f32 %v1434_v53, %v1433_v39 }
 0xb80   :  { %vm1448_vm3 = vcmp.gt.f32.partialorder %v1435_v48, 0.0 }
 0xc46   :  { %v2512_v38 = vpop.f32.mrb[24].mxu1 }
 0xc47   :  { %v1408_v56 = vpop.f32.mrb[25].mxu1  ;;  %vm1438_vm12 = vcmp.gt.f32.partialorder %v2512_v38, 0.0 }
 0xc48   :  { %2669 = vrsqrt.f32 %v1408_v56  ;;  %v2513_v26 = vpop.f32.mrb[26].mxu1  ;;  %vm1436_vm1 = vcmp.gt.f32.partialorder %v1408_v56, 0.0 }
 0xc49   :  { %2671 = vrsqrt.f32 %v2512_v38  ;;  %v1411_v29 = vpop.f32.mrb[27].mxu1  ;;  %vm1439_vm4 = vcmp.gt.f32.partialorder %v2513_v26, 0.0 }
 0xc4a   :  { %2673 = vrsqrt.f32 %v1411_v29  ;;  %vm1437_vm13 = vcmp.gt.f32.partialorder %v1411_v29, 0.0 }
 0xc4b   :  { %2675 = vrsqrt.f32 %v2513_v26 }
 0xc4c   :  { %v2520_v13 = vpop.f32.mrb[16].mxu0  ;;  %2677 = vrsqrt.f32 %v1435_v48 }
 0xc4d   :  { %v1530_v5 = vpop.f32.mrb[17].mxu0 }
 0xc4e   :  { %v2521_v6 = vpop.f32.mrb[18].mxu0 }
 0xc4f   :  { %v1546_v42 = vpack.c.bf16 %v2521_v6, %v2520_v13  ;;  %v1533_v46 = vpop.f32.mrb[19].mxu0 }
 0xc50   :  { %v1545_v57 = vpack.c.bf16 %v1533_v46, %v1530_v5 }
 0xc52   :  { %v2670_v10 = vpop.eup %2669  ;;  %2522 = vmatprep.subr.bf16.mxu1 %v1545_v57 }
 0xc53   :  { %v2672_v51 = vpop.eup %2671  ;;  %2523 = vmatpush3.bf16.msra.mxu1 %v1545_v57  ;;  %v1444_v54 = vsel %vm1436_vm1, %v2670_v10, 0.0 }
 0xc54   :  { %v2674_v11 = vpop.eup %2673  ;;  %1453 = vperm.xlu0 %2623, %v1444_v54   ;;  %2524 = vmatprep.subr.bf16.mxu1 %v1546_v42  ;;  %v1446_v44 = vsel %vm1438_vm12, %v2672_v51, 0.0  ;;  %vm3655_vm12 = vcmask 31744  }
 0xc55   :  { %v1445_v17 = vsel %vm1437_vm13, %v2674_v11, 0.0  ;;  %v2676_v50 = vpop.eup %2675 }
 0xc56   :  { %1458 = vperm.xlu1 %2624, %v1445_v17   ;;  %v1447_v35 = vsel %vm1439_vm4, %v2676_v50, 0.0  ;;  %v2678_v55 = vpop.eup %2677  ;;  %vm3656_vm4 = vmmov %vm3655_vm12 }
 0xc57   :  { %2525 = vmatpush3.bf16.msra.mxu1 %v1546_v42  ;;  %v1450_v29 = vsel %vm1448_vm3, %v2678_v55, 0.0 }
 0xc58   :  { %1463 = vperm.xlu0 %2623, %v1446_v44  }
 0xc5a   :  { %1468 = vperm.xlu1 %2624, %v1447_v35  }
 0xc77   :  { %1627 = vadd.xlane.f32.xlu0 %v1626_v12 }
 0xcd3   :  { %v1454_v36 = vpop.permute.xlu0 %1453 }
 0xcd4   :  { %v1471_v38 = vmul.f32 %v1454_v36, %v3432_v24  ;;  %v1652_v24 = vpack.c.bf16 %v1615_v62, %v1614_v52 }
 0xcd5   :  { %v1459_v56 = vpop.permute.xlu1 %1458 }
 0xcd6   :  { %v1472_v26 = vmul.f32 %v1459_v56, %v3426_v7  ;;  %v1475_v5 = vmul.f32 %v1471_v38, %v1450_v29  ;;  %v1651_v7 = vpack.c.bf16 %v1613_v40, %v1612_v20 }
 0xcd7   :  { %v1464_v13 = vpop.permute.xlu0 %1463 }
 0xcd8   :  { %v1476_v6 = vmul.f32 %v1472_v26, %v1450_v29  ;;  %v1473_v42 = vmul.f32 %v1464_v13, %v3449_v21  ;;  %2530 = vmatprep.subr.bf16.mxu0 %v1651_v7 }
 0xcd9   :  { %v1469_v46 = vpop.permute.xlu1 %1468  ;;  %2531 = vmatpush3.bf16.msra.mxu0 %v1651_v7 }
 0xcda   :  { %v1479_v57 = vpack.c.bf16 %v1476_v6, %v1475_v5  ;;  %v1474_v10 = vmul.f32 %v1469_v46, %v3452_v31  ;;  %v1477_v51 = vmul.f32 %v1473_v42, %v1450_v29  ;;  %2532 = vmatprep.subr.bf16.mxu0 %v1652_v24  ;;  %v1741_v42 = vld [vmem:[%s3617_s12] sm:$0xff]  ;;  %v1742_v46 = vld [vmem:[%s3617_s12 + $0x8] sm:$0xff] }
 0xcdc   :  { %v1478_v54 = vmul.f32 %v1474_v10, %v1450_v29  ;;  %2526 = vmatprep.mubr.msk.bf16.mxu1 %vm375_vm0, %v1479_v57  ;;  %v1743_v10 = vld [vmem:[%s3617_s12 + $0x10] sm:$0xff] }
 0xcdd   :  { %2533 = vmatpush3.bf16.msra.mxu0 %v1652_v24 }
 0xcde   :  { %v3492_v11 = vpack.c.bf16 %v1478_v54, %v1477_v51  ;;  %v1744_v51 = vld [vmem:[%s3617_s12 + $0x18] sm:$0xff] }
 0xcdf   :  { %v1749_v54 = vpack.c.bf16 %v1744_v51, %v1743_v10 }
 0xce0   :  { %2527 = vmatmul.mubr.msk.bf16.vlgmr.msra.gmra.mrb[28].mxu1 %vm375_vm0, %v3492_v11 }
 0xd04   :  { %v1628_v17 = vpop.xlane.xlu0 %1627 }
 0xd05   :  { %v1629_v50 = vrot.slane %v1628_v17, 4 }
 0xd07   :  { %v1630_v21 = vadd.f32 %v1629_v50, %v1628_v17 }
 0xd09   :  { %v1631_v44 = vrot.slane %v1630_v21, 2 }
 0xd0b   :  { %v1632_v31 = vadd.f32 %v1631_v44, %v1630_v21 }
 0xd0d   :  { %v1633_v35 = vrot.slane %v1632_v31, 1 }
 0xd0f   :  { %v1634_v41 = vadd.f32 %v1633_v35, %v1632_v31 }
 0xd11   :  { %2607 = vpush %v1634_v41 }
 0xd42   :  { %s2608_s11 = spop %2607 }
 0xd43   :  { %v1636_v49 = vstv %s2608_s11 }
 0xd44   :  { %2679 = vrsqrt.f32 %v1636_v49  ;;  %vm1639_vm8 = vcmp.eq.f32.partialorder %v1636_v49, inf  ;;  %v1642_v60 = vand.u32 2147483648, %v1636_v49  ;;  %vm1641_vm5 = vcmp.eq.f32.partialorder %v1636_v49, 0.0 }
 0xd4e   :  { %v2680_v58 = vpop.eup %2679 }
 0xd4f   :  { %v1638_v20 = vmul.f32 %v2680_v58, %v1636_v49  ;;  %v1866_v58 = vld [vmem:[%s3618_s14] sm:$0xff] }
 0xd51   :  { %v1640_v40 = vsel %vm1639_vm8, %v1636_v49, %v1638_v20  ;;  %v1868_v20 = vld [vmem:[%s3618_s14 + $0x10] sm:$0xff] }
 0xd52   :  { %v1643_v52 = vsel %vm1641_vm5, %v1642_v60, %v1640_v40  ;;  %v1867_v60 = vld [vmem:[%s3618_s14 + $0x8] sm:$0xff]  ;;  %v1869_v40 = vld [vmem:[%s3618_s14 + $0x18] sm:$0xff] }
 0xd53   :  { %2609 = vpush %v1643_v52  ;;  %v1870_v52 = vmul.f32 %v1866_v58, %v1866_v58 }
 0xd84   :  { %s2610_s7 = spop %2609 }
 0xd85   :  { %s1645_s10 = sadd.f32 1e-16, %s2610_s7 }
 0xd87   :  { %v1646_v28 = vstv %s1645_s10 }
 0xd88   :  { %2681 = vrcp.f32 %v1646_v28 }
 0xd92   :  { %v2682_v45 = vpop.eup %2681 }
 0xd93   :  { %2611 = vpush %v2682_v45  ;;  %v1905_v45 = vpack.c.bf16 %v1867_v60, %v1866_v58 }
 0xdb3   :  { %v2528_v62 = vpop.f32.mrb[28].mxu1 }
 0xdb4   :  { %v1593_v63 = vpop.f32.mrb[29].mxu1  ;;  %v1602_v4 = vadd.f32 %v2528_v62, %v2319_v61  ;;  %v1872_v62 = vmul.f32 %v1868_v20, %v1868_v20 }
 0xdb5   :  { %v1594_v1 = vadd.f32 %v2319_v61, %v1593_v63  ;;  %v2529_v2 = vpop.f32.mrb[30].mxu1  ;;  %v1873_v63 = vmul.f32 %v1869_v40, %v1869_v40 }
 0xdb6   :  { %v1605_v37 = vadd.f32 %v2529_v2, %v2319_v61  ;;  %v1596_v12 = vpop.f32.mrb[31].mxu1  ;;  %v1610_v22 = vmax.f32 %v1602_v4, 0.0  ;;  %v1877_v4 = vsel %vm3653_vm14, %v1872_v62, 0.0 }
 0xdb7   :  { %v1597_v19 = vadd.f32 %v2319_v61, %v1596_v12  ;;  %v1608_v23 = vmax.f32 %v1594_v1, 0.0  ;;  %v1871_v61 = vmul.f32 %v1867_v60, %v1867_v60  ;;  %v1874_v1 = vsel %vm3651_vm10, %v1870_v52, 0.0 }
 0xdb8   :  { %v1611_v16 = vmax.f32 %v1605_v37, 0.0  ;;  %v1879_v12 = vsel %vm3654_vm11, %v1873_v63, 0.0 }
 0xdb9   :  { %v1609_v34 = vmax.f32 %v1597_v19, 0.0  ;;  %v1875_v2 = vsel %vm3652_vm2, %v1871_v61, 0.0 }
 0xdba   :  { %v1650_v33 = vpack.c.bf16 %v1611_v16, %v1610_v22  ;;  %v1876_v37 = vadd.f32 %v1875_v2, %v1874_v1 }
 0xdbb   :  { %v1649_v18 = vpack.c.bf16 %v1609_v34, %v1608_v23 }
 0xdbc   :  { %v1878_v19 = vadd.f32 %v1877_v4, %v1876_v37 }
 0xdbd   :  { %2534 = vmatprep.mubr.msk.bf16.mxu0 %vm375_vm0, %v1649_v18 }
 0xdbe   :  { %2535 = vmatmul.mubr.msk.bf16.vlgmr.msra.gmra.mrb[20].mxu0 %vm375_vm0, %v1650_v33 }
 0xdbf   :  { %2550 = vmatprep.mubr.msk.bf16.mxu0 %vm375_vm0, %v1479_v57  ;;  %v1748_v57 = vpack.c.bf16 %v1742_v46, %v1741_v42  ;;  %v2326_v42 = vld [vmem:[%s3619_s13] ss:$0 sm:$0xff] }
 0xdc1   :  { %2538 = vmatprep.subr.bf16.mxu1 %v1748_v57 }
 0xdc2   :  { %2539 = vmatpush3.bf16.msra.mxu1 %v1748_v57 }
 0xdc3   :  { %2540 = vmatprep.subr.bf16.mxu1 %v1749_v54 }
 0xdc4   :  { %s2612_s2 = spop %2611 }
 0xdc5   :  { %v1708_v9 = vstv %s2612_s2 }
 0xdc6   :  { %2541 = vmatpush3.bf16.msra.mxu1 %v1749_v54 }
 0xdc7   :  { %2554 = vmatprep.subr.bf16.mxu1 %v1905_v45 }
 0xe91   :  { %v2536_v39 = vpop.f32.mrb[20].mxu0 }
 0xe92   :  { %v1711_v53 = vmul.f32 %v2536_v39, %v1708_v9  ;;  %v1693_v48 = vpop.f32.mrb[21].mxu0 }
 0xe93   :  { %v2537_v36 = vpop.f32.mrb[22].mxu0  ;;  %v1709_v55 = vmul.f32 %v1708_v9, %v1693_v48 }
 0xe94   :  { %2683 = vtanh.f32 %v1711_v53  ;;  %v1696_v38 = vpop.f32.mrb[23].mxu0  ;;  %v1712_v26 = vmul.f32 %v2537_v36, %v1708_v9 }
 0xe95   :  { %2685 = vtanh.f32 %v1709_v55  ;;  %v1710_v56 = vmul.f32 %v1708_v9, %v1696_v38  ;;  %v1906_v9 = vpack.c.bf16 %v1869_v40, %v1868_v20 }
 0xe97   :  { %2687 = vtanh.f32 %v1710_v56 }
 0xe98   :  { %2689 = vtanh.f32 %v1712_v26 }
 0xe9e   :  { %v2684_v29 = vpop.eup %2683 }
 0xe9f   :  { %1729 = vperm.xlu1 %2624, %v2684_v29   ;;  %v2686_v13 = vpop.eup %2685 }
 0xea1   :  { %v2688_v5 = vpop.eup %2687 }
 0xea2   :  { %v2690_v6 = vpop.eup %2689 }
 0xea3   :  { %1719 = vperm.xlu1 %2624, %v2686_v13  }
 0xea7   :  { %1724 = vperm.xlu1 %2624, %v2688_v5  }
 0xeab   :  { %1734 = vperm.xlu1 %2624, %v2690_v6  }
 0xf1e   :  { %v1730_v7 = vpop.permute.xlu1 %1729 }
 0xf1f   :  { %v1739_v35 = vmul.f32 %v1730_v7, %v1610_v22 }
 0xf22   :  { %v1720_v24 = vpop.permute.xlu1 %1719 }
 0xf23   :  { %v1737_v50 = vmul.f32 %v1720_v24, %v1608_v23 }
 0xf26   :  { %v1725_v17 = vpop.permute.xlu1 %1724 }
 0xf27   :  { %v1738_v21 = vmul.f32 %v1725_v17, %v1609_v34 }
 0xf29   :  { %v1746_v44 = vpack.c.bf16 %v1738_v21, %v1737_v50 }
 0xf2a   :  { %v1735_v31 = vpop.permute.xlu1 %1734 }
 0xf2b   :  { %v1740_v41 = vmul.f32 %v1735_v31, %v1611_v16  ;;  %2542 = vmatprep.mubr.msk.bf16.mxu1 %vm375_vm0, %v1746_v44  ;;  %v1880_v16 = vadd.f32 %v1879_v12, %v1878_v19  ;;  %v1999_v19 = vld [vmem:[%s3620_s15] sm:$0xff] }
 0xf2d   :  { %v1747_v49 = vpack.c.bf16 %v1740_v41, %v1739_v35  ;;  %1881 = vadd.xlane.f32.xlu1 %v1880_v16  ;;  %v2000_v16 = vld [vmem:[%s3620_s15 + $0x8] sm:$0xff] }
 0xf2f   :  { %2543 = vmatmul.mubr.msk.bf16.vlgmr.msra.gmra.mrb[32].mxu1 %vm375_vm0, %v1747_v49 }
 0xf30   :  { %2555 = vmatpush3.bf16.msra.mxu1 %v1905_v45 }
 0xf31   :  { %2556 = vmatprep.subr.bf16.mxu1 %v1906_v9 }
 0xf34   :  { %2557 = vmatpush3.bf16.msra.mxu1 %v1906_v9 }
 0xfba   :  { %v1882_v39 = vpop.xlane.xlu1 %1881 }
 0xfbb   :  { %v1883_v53 = vrot.slane %v1882_v39, 4 }
 0xfbd   :  { %v1884_v48 = vadd.f32 %v1883_v53, %v1882_v39 }
 0xfbf   :  { %v1885_v36 = vrot.slane %v1884_v48, 2 }
 0xfc1   :  { %v1886_v55 = vadd.f32 %v1885_v36, %v1884_v48 }
 0xfc3   :  { %v1887_v38 = vrot.slane %v1886_v55, 1 }
 0xfc5   :  { %v1888_v56 = vadd.f32 %v1887_v38, %v1886_v55 }
 0xfc7   :  { %2613 = vpush %v1888_v56 }
 0xff8   :  { %s2614_s14 = spop %2613 }
 0xff9   :  { %v1890_v26 = vstv %s2614_s14 }
 0xffa   :  { %2691 = vrsqrt.f32 %v1890_v26  ;;  %vm1893_vm1 = vcmp.eq.f32.partialorder %v1890_v26, inf  ;;  %vm1895_vm13 = vcmp.eq.f32.partialorder %v1890_v26, 0.0 }
0x1002   :  { %v2544_v23 = vpop.f32.mrb[32].mxu1 }
0x1003   :  { %v1790_v34 = vpop.f32.mrb[33].mxu1 }
0x1004   :  { %v2545_v22 = vpop.f32.mrb[34].mxu1  ;;  %v2692_v29 = vpop.eup %2691 }
0x1005   :  { %v1806_v18 = vpack.c.bf16 %v2545_v22, %v2544_v23  ;;  %v1793_v33 = vpop.f32.mrb[35].mxu1  ;;  %v1892_v13 = vmul.f32 %v2692_v29, %v1890_v26  ;;  %v2006_v23 = vpack.c.bf16 %v2000_v16, %v1999_v19  ;;  %v2002_v22 = vld [vmem:[%s3620_s15 + $0x18] sm:$0xff] }
0x1006   :  { %v1805_v28 = vpack.c.bf16 %v1793_v33, %v1790_v34  ;;  %v2001_v34 = vld [vmem:[%s3620_s15 + $0x10] sm:$0xff] }
0x1007   :  { %v1894_v5 = vsel %vm1893_vm1, %v1890_v26, %v1892_v13 }
0x1008   :  { %2546 = vmatprep.subr.bf16.mxu0 %v1805_v28 }
0x1009   :  { %2547 = vmatpush3.bf16.msra.mxu0 %v1805_v28 }
0x100a   :  { %2548 = vmatprep.subr.bf16.mxu0 %v1806_v18 }
0x100d   :  { %2549 = vmatpush3.bf16.msra.mxu0 %v1806_v18  ;;  %v2007_v18 = vpack.c.bf16 %v2002_v22, %v2001_v34 }
0x100e   :  { %2562 = vmatprep.subr.bf16.mxu0 %v2006_v23 }
0x1010   :  { %2551 = vmatmul.mubr.msk.bf16.vlgmr.msra.gmra.mrb[24].mxu0 %vm375_vm0, %v3492_v11  ;;  %v1896_v11 = vand.u32 2147483648, %v1890_v26 }
0x1011   :  { %2563 = vmatpush3.bf16.msra.mxu0 %v2006_v23 }
0x1012   :  { %v1897_v6 = vsel %vm1895_vm13, %v1896_v11, %v1894_v5  ;;  %2564 = vmatprep.subr.bf16.mxu0 %v2007_v18 }
0x1013   :  { %2615 = vpush %v1897_v6 }
0x1015   :  { %2565 = vmatpush3.bf16.msra.mxu0 %v2007_v18 }
0x1044   :  { %s2616_s11 = spop %2615 }
0x1045   :  { %s1899_s13 = sadd.f32 1e-16, %s2616_s11 }
0x1047   :  { %v1900_v49 = vstv %s1899_s13 }
0x1048   :  { %2693 = vrcp.f32 %v1900_v49 }
0x1052   :  { %v2694_v58 = vpop.eup %2693 }
0x1053   :  { %2617 = vpush %v2694_v58 }
0x1084   :  { %s2618_s4 = spop %2617 }
0x1085   :  { %v1962_v20 = vstv %s2618_s4 }
0x10e3   :  { %v2552_v46 = vpop.f32.mrb[24].mxu0 }
0x10e4   :  { %v1847_v57 = vpop.f32.mrb[25].mxu0  ;;  %v1856_v54 = vadd.f32 %v2552_v46, %v2326_v42 }
0x10e5   :  { %v1848_v10 = vadd.f32 %v2326_v42, %v1847_v57  ;;  %v2553_v51 = vpop.f32.mrb[26].mxu0 }
0x10e6   :  { %v1859_v7 = vadd.f32 %v2553_v51, %v2326_v42  ;;  %v1850_v24 = vpop.f32.mrb[27].mxu0  ;;  %v1864_v31 = vmax.f32 %v1856_v54, 0.0 }
0x10e7   :  { %v1851_v17 = vadd.f32 %v2326_v42, %v1850_v24  ;;  %v1862_v21 = vmax.f32 %v1848_v10, 0.0 }
0x10e8   :  { %v1865_v50 = vmax.f32 %v1859_v7, 0.0 }
0x10e9   :  { %v1863_v44 = vmax.f32 %v1851_v17, 0.0 }
0x10ea   :  { %v1904_v41 = vpack.c.bf16 %v1865_v50, %v1864_v31 }
0x10eb   :  { %v1903_v35 = vpack.c.bf16 %v1863_v44, %v1862_v21 }
0x10ed   :  { %2558 = vmatprep.mubr.msk.bf16.mxu1 %vm375_vm0, %v1903_v35 }
0x10ee   :  { %2559 = vmatmul.mubr.msk.bf16.vlgmr.msra.gmra.mrb[36].mxu1 %vm375_vm0, %v1904_v41 }
0x10ef   :  { %2574 = vmatprep.mubr.msk.bf16.mxu1 %vm375_vm0, %v3290_v3 }
0x11c1   :  { %v2560_v60 = vpop.f32.mrb[36].mxu1 }
0x11c2   :  { %v1947_v40 = vpop.f32.mrb[37].mxu1  ;;  %v1965_v63 = vmul.f32 %v2560_v60, %v1962_v20 }
0x11c3   :  { %v1963_v52 = vmul.f32 %v1962_v20, %v1947_v40  ;;  %v2561_v61 = vpop.f32.mrb[38].mxu1 }
0x11c4   :  { %v1950_v62 = vpop.f32.mrb[39].mxu1  ;;  %v1966_v2 = vmul.f32 %v2561_v61, %v1962_v20 }
0x11c5   :  { %2695 = vtanh.f32 %v1963_v52  ;;  %v1964_v1 = vmul.f32 %v1962_v20, %v1950_v62 }
0x11c7   :  { %2697 = vtanh.f32 %v1964_v1 }
0x11c8   :  { %2699 = vtanh.f32 %v1965_v63 }
0x11c9   :  { %2701 = vtanh.f32 %v1966_v2 }
0x11cf   :  { %v2696_v3 = vpop.eup %2695 }
0x11d0   :  { %1973 = vperm.xlu0 %2623, %v2696_v3  }
0x11d1   :  { %v2698_v4 = vpop.eup %2697 }
0x11d2   :  { %1978 = vperm.xlu1 %2624, %v2698_v4   ;;  %v2700_v37 = vpop.eup %2699 }
0x11d3   :  { %v2702_v12 = vpop.eup %2701 }
0x11d4   :  { %1983 = vperm.xlu0 %2623, %v2700_v37  }
0x11d8   :  { %1988 = vperm.xlu0 %2623, %v2702_v12  }
0x124f   :  { %v1974_v33 = vpop.permute.xlu0 %1973 }
0x1250   :  { %v1991_v28 = vmul.f32 %v1974_v33, %v1862_v21 }
0x1251   :  { %v1979_v45 = vpop.permute.xlu1 %1978 }
0x1252   :  { %v1992_v9 = vmul.f32 %v1979_v45, %v1863_v44  ;;  %v1995_v53 = vmul.f32 %v1991_v28, %v3421_v0 }
0x1253   :  { %v1984_v39 = vpop.permute.xlu0 %1983 }
0x1254   :  { %v1996_v48 = vmul.f32 %v1992_v9, %v3415_v59  ;;  %v1993_v55 = vmul.f32 %v1984_v39, %v1864_v31  ;;  %v2128_v59 = vld [vmem:[%s3621_s17] sm:$0xff] }
0x1256   :  { %v2004_v36 = vpack.c.bf16 %v1996_v48, %v1995_v53  ;;  %v1997_v26 = vmul.f32 %v1993_v55, %v3429_v8  ;;  %v2129_v8 = vld [vmem:[%s3621_s17 + $0x8] sm:$0xff] }
0x1257   :  { %v1989_v38 = vpop.permute.xlu0 %1988  ;;  %v2135_v57 = vpack.c.bf16 %v2129_v8, %v2128_v59 }
0x1258   :  { %v1994_v56 = vmul.f32 %v1989_v38, %v1865_v50  ;;  %2566 = vmatprep.mubr.msk.bf16.mxu0 %vm375_vm0, %v2004_v36 }
0x1259   :  { %2578 = vmatprep.subr.bf16.mxu0 %v2135_v57 }
0x125a   :  { %v1998_v29 = vmul.f32 %v1994_v56, %v3437_v30  ;;  %v2130_v30 = vld [vmem:[%s3621_s17 + $0x10] sm:$0xff] }
0x125c   :  { %v2005_v11 = vpack.c.bf16 %v1998_v29, %v1997_v26 }
0x125e   :  { %2567 = vmatmul.mubr.msk.bf16.vlgmr.msra.gmra.mrb[28].mxu0 %vm375_vm0, %v2005_v11 }
0x125f   :  { %2579 = vmatpush3.bf16.msra.mxu0 %v2135_v57 }
0x1331   :  { %v2568_v13 = vpop.f32.mrb[28].mxu0 }
0x1332   :  { %v2048_v5 = vpop.f32.mrb[29].mxu0 }
0x1333   :  { %v2569_v6 = vpop.f32.mrb[30].mxu0 }
0x1334   :  { %v2064_v42 = vpack.c.bf16 %v2569_v6, %v2568_v13  ;;  %v2051_v0 = vpop.f32.mrb[31].mxu0 }
0x1335   :  { %v2063_v46 = vpack.c.bf16 %v2051_v0, %v2048_v5 }
0x1337   :  { %2570 = vmatprep.subr.bf16.mxu1 %v2063_v46 }
0x1338   :  { %2571 = vmatpush3.bf16.msra.mxu1 %v2063_v46 }
0x1339   :  { %2572 = vmatprep.subr.bf16.mxu1 %v2064_v42 }
0x133c   :  { %2573 = vmatpush3.bf16.msra.mxu1 %v2064_v42 }
0x133f   :  { %2575 = vmatmul.mubr.msk.bf16.vlgmr.msra.gmra.mrb[40].mxu1 %vm375_vm0, %v3296_v14  ;;  %v2131_v14 = vld [vmem:[%s3621_s17 + $0x18] sm:$0xff] }
0x1340   :  { %2590 = vmatprep.mubr.msk.bf16.mxu1 %vm375_vm0, %v3072_v43  ;;  %v2136_v10 = vpack.c.bf16 %v2131_v14, %v2130_v30  ;;  %v2333_v43 = vld [vmem:[%s3622_s16] ss:$0 sm:$0xff] }
0x1342   :  { %2580 = vmatprep.subr.bf16.mxu0 %v2136_v10 }
0x1343   :  { %2581 = vmatpush3.bf16.msra.mxu0 %v2136_v10 }
0x1412   :  { %v2576_v51 = vpop.f32.mrb[40].mxu1 }
0x1413   :  { %v2114_v54 = vadd.f32 %v2576_v51, %v2333_v43  ;;  %v2105_v7 = vpop.f32.mrb[41].mxu1 }
0x1414   :  { %v2106_v24 = vadd.f32 %v2333_v43, %v2105_v7  ;;  %v2577_v17 = vpop.f32.mrb[42].mxu1 }
0x1415   :  { %v2122_v50 = vmax.f32 %v2114_v54, 0.0  ;;  %v2117_v21 = vadd.f32 %v2577_v17, %v2333_v43  ;;  %v2108_v44 = vpop.f32.mrb[43].mxu1 }
0x1416   :  { %v2120_v31 = vmax.f32 %v2106_v24, 0.0  ;;  %v2109_v35 = vadd.f32 %v2333_v43, %v2108_v44 }
0x1417   :  { %v2123_v41 = vmax.f32 %v2117_v21, 0.0  ;;  %v2126_v58 = vmul.f32 %v2122_v50, %v3239_v32 }
0x1418   :  { %v2121_v49 = vmax.f32 %v2109_v35, 0.0  ;;  %v2124_v20 = vmul.f32 %v2120_v31, %v3231_v27 }
0x1419   :  { %v2127_v60 = vmul.f32 %v2123_v41, %v3249_v47 }
0x141a   :  { %v2125_v40 = vmul.f32 %v2121_v49, %v3225_v15  ;;  %v2338_v15 = vld [vmem:[%s3623_s18] ss:$0 sm:$0xff] }
0x141b   :  { %v2134_v52 = vpack.c.bf16 %v2127_v60, %v2126_v58 }
0x141c   :  { %v2133_v61 = vpack.c.bf16 %v2125_v40, %v2124_v20 }
0x141e   :  { %2582 = vmatprep.mubr.msk.bf16.mxu0 %vm375_vm0, %v2133_v61 }
0x141f   :  { %2583 = vmatmul.mubr.msk.bf16.vlgmr.msra.gmra.mrb[32].mxu0 %vm375_vm0, %v2134_v52 }
0x14f2   :  { %v2584_v62 = vpop.f32.mrb[32].mxu0 }
0x14f3   :  { %v2177_v63 = vpop.f32.mrb[33].mxu0 }
0x14f4   :  { %v2585_v1 = vpop.f32.mrb[34].mxu0 }
0x14f5   :  { %v2193_v2 = vpack.c.bf16 %v2585_v1, %v2584_v62  ;;  %v2180_v3 = vpop.f32.mrb[35].mxu0 }
0x14f6   :  { %v2192_v4 = vpack.c.bf16 %v2180_v3, %v2177_v63 }
0x14f8   :  { %2586 = vmatprep.subr.bf16.mxu1 %v2192_v4 }
0x14f9   :  { %2587 = vmatpush3.bf16.msra.mxu1 %v2192_v4 }
0x14fa   :  { %2588 = vmatprep.subr.bf16.mxu1 %v2193_v2 }
0x14fd   :  { %2589 = vmatpush3.bf16.msra.mxu1 %v2193_v2 }
0x1500   :  { %2591 = vmatmul.mubr.msk.bf16.vlgmr.msra.gmra.mrb[44].mxu1 %vm375_vm0, %v3077_v25  ;;  %vm3657_vm0 = vmmov %vm3656_vm4 }
0x1501   :  { %vm3658_vm9 = vmmov %vm3657_vm0 }
0x15d3   :  { %v2592_v27 = vpop.f32.mrb[44].mxu1 }
0x15d4   :  { %v2243_v32 = vadd.f32 %v2592_v27, %v2338_v15  ;;  %v2234_v47 = vpop.f32.mrb[45].mxu1 }
0x15d5   :  { %v2235_v37 = vadd.f32 %v2338_v15, %v2234_v47  ;;  %v2593_v12 = vpop.f32.mrb[46].mxu1 }
0x15d6   :  { %2251 = vst.msk [vmem:[%s3624_s19 + $0x10] sm:$0xff] %vm3655_vm12, %v2243_v32  ;;  %v2246_v19 = vadd.f32 %v2593_v12, %v2338_v15  ;;  %v2237_v16 = vpop.f32.mrb[47].mxu1 }
0x15d7   :  { %2249 = vst.msk [vmem:[%s3624_s19] sm:$0xff] %vm3656_vm4, %v2235_v37  ;;  %v2238_v25 = vadd.f32 %v2338_v15, %v2237_v16 }
0x15d8   :  { %2252 = vst.msk [vmem:[%s3624_s19 + $0x18] sm:$0xff] %vm3657_vm0, %v2246_v19 }
0x15d9   :  { %2250 = vst.msk [vmem:[%s3624_s19 + $0x8] sm:$0xff] %vm3658_vm9, %v2238_v25 }

</bundles_post_ra>
